<compile_context>
chip_gen: v7x
topology: tpu7x:2x2x1
jax: 0.10.0
libtpu: 0.0.40
codegen_flags: <defaults>
</compile_context>

<pallas_src>
import functools

import jax
import jax.numpy as jnp
from jax.experimental import pallas as pl
from jax.experimental.pallas import tpu as pltpu

_LANES = 128
_OUT_LANES = 2 * _LANES


def _project3d_kernel(p_ref, perm_ref, pts_ref, out_ref, *, eps, planes, bb):
    """One grid step: project `bb` batch rows x `ts` lane-slabs of points.

    p_ref:    (B, 12)               SMEM  folded (K@T * norm) rows, row-major 3x4
    perm_ref: (2, 128, 256)         VMEM  0/1 riffle matrices (x->even, y->odd lanes)
    pts_ref:  (bb, planes, ts, 128) VMEM  homogeneous points as dense lane slabs
    out_ref:  (bb, ts, 256)         VMEM  interleaved (x, y) pixel coords
    """
    b0 = pl.program_id(0) * bb
    px_mat = perm_ref[0, :, :]            # hoisted out of the sub-batch loop
    py_mat = perm_ref[1, :, :]

    for i in range(bb):                   # small, fully unrolled
        b = b0 + i
        px = pts_ref[i, 0, :, :]
        py = pts_ref[i, 1, :, :]
        pz = pts_ref[i, 2, :, :]

        def p(j, _b=b):
            return p_ref[_b, j]           # SMEM scalar -> VPU broadcast FMA

        cam_x = p(0) * px + p(1) * py + p(2) * pz
        cam_y = p(4) * px + p(5) * py + p(6) * pz
        cam_z = p(8) * px + p(9) * py + p(10) * pz
        if planes == 4:                   # generic homogeneous w
            pw = pts_ref[i, 3, :, :]
            cam_x = cam_x + p(3) * pw
            cam_y = cam_y + p(7) * pw
            cam_z = cam_z + p(11) * pw
        else:                             # w == 1: translation is a scalar add
            cam_x = cam_x + p(3)
            cam_y = cam_y + p(7)
            cam_z = cam_z + p(11)

        z = cam_z + eps
        inv_z = pl.reciprocal(z, approx=True)   # EUP slot (idle otherwise)
        inv_z = inv_z * (2.0 - z * inv_z)       # one Newton step -> ~1 ulp

        pix_x = cam_x * inv_z - 1.0       # pixel normalization folded into P
        pix_y = cam_y * inv_z - 1.0

        # Riffle x/y into [x0,y0,x1,y1,...] on the idle MXU: 0/1 weights, exact.
        out_ref[i, :, :] = (
            jnp.dot(pix_x, px_mat, preferred_element_type=jnp.float32,
                    precision=jax.lax.Precision.HIGHEST)
            + jnp.dot(pix_y, py_mat, preferred_element_type=jnp.float32,
                      precision=jax.lax.Precision.HIGHEST))


def _round_up8(x):
    return ((x + 7) // 8) * 8


def _choose_tiles(batch, n_slabs, planes, max_block_bytes, target_steps=4):
    """Pick (batch rows per step, slab rows per step).

    Double-buffered VMEM per (batch row, slab row) = `planes` input planes of
    128 f32 lanes + 256 f32 output lanes.  The slab tile is a multiple of 8 (or
    the full extent) and is clamped to the budget; the slab grid axis is cdiv so
    ragged tails become partial blocks, never an over-budget fallback tile.
    """
    unit = 2 * (planes * _LANES + _OUT_LANES) * 4
    cap = max(8, (max_block_bytes // unit) // 8 * 8)       # slab rows that fit

    # Enough slab steps to (a) fit the VMEM budget and (b) expose >=target_steps
    # grid steps overall (v7x megacore sharding + pipeline ramp-up).
    want = max(-(-n_slabs // cap), -(-target_steps // batch))
    if want <= 1 or n_slabs <= 8:
        ts = n_slabs
    else:
        ts = min(_round_up8(-(-n_slabs // want)), n_slabs)
    slab_steps = -(-n_slabs // ts)

    # Merge batch rows per step only when a whole row is a single cheap step and
    # the grid still keeps >= min(target_steps, batch) steps.
    bb = 1
    if slab_steps == 1 and batch > 1:
        max_bb = max(1, cap // max(ts, 1))
        for cand in range(min(batch, max_bb), 0, -1):
            if batch % cand == 0 and (batch // cand) >= min(target_steps, batch):
                bb = cand
                break
    return bb, ts


def project3d(points, K, T, batch_size, height, width, eps=1e-7,
              assume_unit_w=True, max_block_bytes=12 * 1024 * 1024):
    """points: (B, 4, H*W) f32, K/T: (B, 4, 4) f32 -> (B, H, W, 2) f32.

    assume_unit_w=True never streams the homogeneous w row (BackprojectDepth
    emits w == 1) and applies the translation column as scalar adds.
    max_block_bytes is the double-buffered per-step VMEM budget (default safe
    for v5e's 16 MiB scoped VMEM; can be raised to ~32-48 MiB on v6e).
    """
    B, height, width = int(batch_size), int(height), int(width)
    N = height * width
    assert points.shape == (B, 4, N), points.shape
    planes = 3 if assume_unit_w else 4

    # Fold K @ T and the per-axis normalization ((v/(S-1) - 0.5) * 2) into one
    # (B, 3, 4) matrix; the z row (the divide denominator) stays unscaled.
    P = jnp.matmul(K.astype(jnp.float32), T.astype(jnp.float32),
                   precision=jax.lax.Precision.HIGHEST)[:, :3, :]
    norm = jnp.array([2.0 / (width - 1), 2.0 / (height - 1), 1.0], jnp.float32)
    p_flat = (P * norm[None, :, None]).reshape(B, 12)

    # View the pixel axis as dense (n_slabs, 128) lane slabs.  For 128-aligned
    # H*W (all standard monodepth resolutions) this reshape is free (no copy),
    # and the w row is simply never touched by the DMA.
    pts = points.astype(jnp.float32)
    n_pad = (-N) % _LANES
    if n_pad:
        # TODO(synk): this pad materializes an HBM copy; producers should emit a
        # 128-aligned pixel axis so this branch never triggers.
        pts = jnp.pad(pts[:, :planes, :], ((0, 0), (0, 0), (0, n_pad)))
    n_tot = N + n_pad
    n_slabs = n_tot // _LANES
    kp = pts.shape[1]                       # plane rows physically in the array
    pts = pts.reshape(B, kp, n_slabs, _LANES)

    # 0/1 riffle matrices: x -> even output lanes, y -> odd output lanes.
    lane = jnp.arange(_LANES, dtype=jnp.int32)[:, None]
    col = jnp.arange(_OUT_LANES, dtype=jnp.int32)[None, :]
    perm = jnp.stack([(col == 2 * lane).astype(jnp.float32),
                      (col == 2 * lane + 1).astype(jnp.float32)])   # (2,128,256)

    bb, ts = _choose_tiles(B, n_slabs, planes, max_block_bytes)
    grid = (B // bb, pl.cdiv(n_slabs, ts))

    kernel = functools.partial(_project3d_kernel, eps=float(eps),
                               planes=planes, bb=bb)
    out = pl.pallas_call(
        kernel,
        out_shape=jax.ShapeDtypeStruct((B, n_slabs, _OUT_LANES), jnp.float32),
        grid_spec=pltpu.PrefetchScalarGridSpec(
            num_scalar_prefetch=0,
            grid=grid,
            in_specs=[
                # Folded projection coefficients: whole (B, 12) array in SMEM.
                pl.BlockSpec(memory_space=pltpu.MemorySpace.SMEM),
                # Riffle matrices: constant block index -> stays resident.
                pl.BlockSpec((2, _LANES, _OUT_LANES), lambda b, s: (0, 0, 0)),
                # Points: plane axis is `planes` wide, so row 3 (w) is skipped
                # entirely when assume_unit_w.
                pl.BlockSpec((bb, planes, ts, _LANES), lambda b, s: (b, 0, s, 0)),
            ],
            out_specs=pl.BlockSpec((bb, ts, _OUT_LANES), lambda b, s: (b, s, 0)),
        ),
        compiler_params=pltpu.CompilerParams(
            dimension_semantics=("parallel", "parallel"),
            vmem_limit_bytes=int(max_block_bytes) + (4 << 20)),
        cost_estimate=pl.CostEstimate(
            flops=B * n_tot * (4 * _OUT_LANES + 24),
            transcendentals=B * n_tot,
            bytes_accessed=B * n_tot * (planes * 4 + 8) + 48 * B),
    )(p_flat, perm, pts)

    # (B, n_slabs, 256) row-major is already ... x0 y0 x1 y1 ... -> free reshape
    # to (B, H, W, 2); no post-kernel transpose.
    pix = out.reshape(B, n_slabs * _OUT_LANES)
    if n_pad:
        pix = pix[:, : 2 * N]
    return pix.reshape(B, height, width, 2)


def _reference(points, K, T, batch_size, height, width, eps=1e-7):
    P = jnp.matmul(K, T, precision=jax.lax.Precision.HIGHEST)[:, :3, :]
    cam = jnp.matmul(P, points, precision=jax.lax.Precision.HIGHEST)
    pix = cam[:, :2, :] / (cam[:, 2:3, :] + eps)
    pix = pix.reshape(batch_size, 2, height, width).transpose(0, 2, 3, 1)
    pix = pix.at[..., 0].divide(width - 1)
    pix = pix.at[..., 1].divide(height - 1)
    return (pix - 0.5) * 2.0


if __name__ == "__main__":
    B, H, W = 2, 16, 16
    N = H * W

    key = jax.random.PRNGKey(0)
    k_pts, k_t = jax.random.split(key, 2)

    # Homogeneous 3D points with w == 1 (as produced by BackprojectDepth).
    xyz = jax.random.normal(k_pts, (B, 3, N), dtype=jnp.float32) * 2.0
    xyz = xyz.at[:, 2, :].add(5.0)            # keep depth positive
    points = jnp.concatenate([xyz, jnp.ones((B, 1, N), jnp.float32)], axis=1)

    # Deterministic intrinsics-like K and transform-like T (4x4, batched).
    K = jnp.tile(jnp.array([[0.58 * W, 0.0, 0.5 * W, 0.0],
                            [0.0, 1.92 * H, 0.5 * H, 0.0],
                            [0.0, 0.0, 1.0, 0.0],
                            [0.0, 0.0, 0.0, 1.0]], dtype=jnp.float32),
                 (B, 1, 1))
    T = (jnp.tile(jnp.eye(4, dtype=jnp.float32), (B, 1, 1))
         + 0.01 * jax.random.normal(k_t, (B, 4, 4), dtype=jnp.float32))

    ref = _reference(points, K, T, B, H, W)

    # Fast path: w-plane skipped (BackprojectDepth semantics).
    out = jax.block_until_ready(project3d(points, K, T, B, H, W))
    assert out.shape == (B, H, W, 2), out.shape
    assert jnp.allclose(out, ref, atol=1e-4, rtol=1e-4), float(
        jnp.max(jnp.abs(out - ref)))

    # Generic path: all 4 homogeneous planes streamed.
    out4 = jax.block_until_ready(
        project3d(points, K, T, B, H, W, assume_unit_w=False))
    assert jnp.allclose(out4, ref, atol=1e-4, rtol=1e-4), float(
        jnp.max(jnp.abs(out4 - ref)))

    print("KERNEL_OK")
</pallas_src>

<mosaic_0001>
module attributes {stable_mosaic.version = 11 : i64} {
  func.func @_project3d_kernel(%arg0: i32, %arg1: i32, %arg2: memref<2x12xf32, #tpu.memory_space<smem>>, %arg3: memref<2x128x256xf32, #tpu.memory_space<vmem>>, %arg4: memref<1x3x2x128xf32, #tpu.memory_space<vmem>>, %arg5: memref<1x2x256xf32, #tpu.memory_space<vmem>>) attributes {dimension_semantics = [#tpu.dimension_semantics<parallel>, #tpu.dimension_semantics<parallel>], iteration_bounds = array<i64: 2, 1>, scalar_prefetch = 0 : i64, scratch_operands = 0 : i64, tpu.core_type = #tpu.core_type<tc>, window_params = [{transform_indices = @transform_0, window_bounds = array<i64: 2, 12>}, {pipeline_mode = #tpu.pipeline_mode<synchronous>, transform_indices = @transform_1, window_bounds = array<i64: 2, 128, 256>}, {transform_indices = @transform_2, window_bounds = array<i64: 1, 3, 2, 128>}, {transform_indices = @transform_3, window_bounds = array<i64: 1, 2, 256>}]} {
    %c1_i32 = arith.constant 1 : i32
    %0 = arith.muli %arg0, %c1_i32 : i32
    %c0 = arith.constant 0 : index
    %c0_0 = arith.constant 0 : index
    %c0_1 = arith.constant 0 : index
    %1 = vector.load %arg3[%c0, %c0_0, %c0_1] : memref<2x128x256xf32, #tpu.memory_space<vmem>>, vector<1x128x256xf32>
    %2 = vector.shape_cast %1 : vector<1x128x256xf32> to vector<128x256xf32>
    %c1 = arith.constant 1 : index
    %c0_2 = arith.constant 0 : index
    %c0_3 = arith.constant 0 : index
    %3 = vector.load %arg3[%c1, %c0_2, %c0_3] : memref<2x128x256xf32, #tpu.memory_space<vmem>>, vector<1x128x256xf32>
    %4 = vector.shape_cast %3 : vector<1x128x256xf32> to vector<128x256xf32>
    %c0_i32 = arith.constant 0 : i32
    %5 = arith.addi %0, %c0_i32 : i32
    %c0_4 = arith.constant 0 : index
    %c0_5 = arith.constant 0 : index
    %c0_6 = arith.constant 0 : index
    %c0_7 = arith.constant 0 : index
    %6 = vector.load %arg4[%c0_4, %c0_5, %c0_6, %c0_7] : memref<1x3x2x128xf32, #tpu.memory_space<vmem>>, vector<1x1x2x128xf32>
    %7 = vector.shape_cast %6 : vector<1x1x2x128xf32> to vector<2x128xf32>
    %c0_8 = arith.constant 0 : index
    %c1_9 = arith.constant 1 : index
    %c0_10 = arith.constant 0 : index
    %c0_11 = arith.constant 0 : index
    %8 = vector.load %arg4[%c0_8, %c1_9, %c0_10, %c0_11] : memref<1x3x2x128xf32, #tpu.memory_space<vmem>>, vector<1x1x2x128xf32>
    %9 = vector.shape_cast %8 : vector<1x1x2x128xf32> to vector<2x128xf32>
    %c0_12 = arith.constant 0 : index
    %c2 = arith.constant 2 : index
    %c0_13 = arith.constant 0 : index
    %c0_14 = arith.constant 0 : index
    %10 = vector.load %arg4[%c0_12, %c2, %c0_13, %c0_14] : memref<1x3x2x128xf32, #tpu.memory_space<vmem>>, vector<1x1x2x128xf32>
    %11 = vector.shape_cast %10 : vector<1x1x2x128xf32> to vector<2x128xf32>
    %12 = arith.index_cast %5 : i32 to index
    %c0_15 = arith.constant 0 : index
    %13 = memref.load %arg2[%12, %c0_15] : memref<2x12xf32, #tpu.memory_space<smem>>
    %14 = vector.broadcast %13 : f32 to vector<2x128xf32>
    %15 = arith.mulf %14, %7 : vector<2x128xf32>
    %16 = arith.index_cast %5 : i32 to index
    %c1_16 = arith.constant 1 : index
    %17 = memref.load %arg2[%16, %c1_16] : memref<2x12xf32, #tpu.memory_space<smem>>
    %18 = vector.broadcast %17 : f32 to vector<2x128xf32>
    %19 = arith.mulf %18, %9 : vector<2x128xf32>
    %20 = arith.addf %15, %19 : vector<2x128xf32>
    %21 = arith.index_cast %5 : i32 to index
    %c2_17 = arith.constant 2 : index
    %22 = memref.load %arg2[%21, %c2_17] : memref<2x12xf32, #tpu.memory_space<smem>>
    %23 = vector.broadcast %22 : f32 to vector<2x128xf32>
    %24 = arith.mulf %23, %11 : vector<2x128xf32>
    %25 = arith.addf %20, %24 : vector<2x128xf32>
    %26 = arith.index_cast %5 : i32 to index
    %c4 = arith.constant 4 : index
    %27 = memref.load %arg2[%26, %c4] : memref<2x12xf32, #tpu.memory_space<smem>>
    %28 = vector.broadcast %27 : f32 to vector<2x128xf32>
    %29 = arith.mulf %28, %7 : vector<2x128xf32>
    %30 = arith.index_cast %5 : i32 to index
    %c5 = arith.constant 5 : index
    %31 = memref.load %arg2[%30, %c5] : memref<2x12xf32, #tpu.memory_space<smem>>
    %32 = vector.broadcast %31 : f32 to vector<2x128xf32>
    %33 = arith.mulf %32, %9 : vector<2x128xf32>
    %34 = arith.addf %29, %33 : vector<2x128xf32>
    %35 = arith.index_cast %5 : i32 to index
    %c6 = arith.constant 6 : index
    %36 = memref.load %arg2[%35, %c6] : memref<2x12xf32, #tpu.memory_space<smem>>
    %37 = vector.broadcast %36 : f32 to vector<2x128xf32>
    %38 = arith.mulf %37, %11 : vector<2x128xf32>
    %39 = arith.addf %34, %38 : vector<2x128xf32>
    %40 = arith.index_cast %5 : i32 to index
    %c8 = arith.constant 8 : index
    %41 = memref.load %arg2[%40, %c8] : memref<2x12xf32, #tpu.memory_space<smem>>
    %42 = vector.broadcast %41 : f32 to vector<2x128xf32>
    %43 = arith.mulf %42, %7 : vector<2x128xf32>
    %44 = arith.index_cast %5 : i32 to index
    %c9 = arith.constant 9 : index
    %45 = memref.load %arg2[%44, %c9] : memref<2x12xf32, #tpu.memory_space<smem>>
    %46 = vector.broadcast %45 : f32 to vector<2x128xf32>
    %47 = arith.mulf %46, %9 : vector<2x128xf32>
    %48 = arith.addf %43, %47 : vector<2x128xf32>
    %49 = arith.index_cast %5 : i32 to index
    %c10 = arith.constant 10 : index
    %50 = memref.load %arg2[%49, %c10] : memref<2x12xf32, #tpu.memory_space<smem>>
    %51 = vector.broadcast %50 : f32 to vector<2x128xf32>
    %52 = arith.mulf %51, %11 : vector<2x128xf32>
    %53 = arith.addf %48, %52 : vector<2x128xf32>
    %54 = arith.index_cast %5 : i32 to index
    %c3 = arith.constant 3 : index
    %55 = memref.load %arg2[%54, %c3] : memref<2x12xf32, #tpu.memory_space<smem>>
    %56 = vector.broadcast %55 : f32 to vector<2x128xf32>
    %57 = arith.addf %25, %56 : vector<2x128xf32>
    %58 = arith.index_cast %5 : i32 to index
    %c7 = arith.constant 7 : index
    %59 = memref.load %arg2[%58, %c7] : memref<2x12xf32, #tpu.memory_space<smem>>
    %60 = vector.broadcast %59 : f32 to vector<2x128xf32>
    %61 = arith.addf %39, %60 : vector<2x128xf32>
    %62 = arith.index_cast %5 : i32 to index
    %c11 = arith.constant 11 : index
    %63 = memref.load %arg2[%62, %c11] : memref<2x12xf32, #tpu.memory_space<smem>>
    %64 = vector.broadcast %63 : f32 to vector<2x128xf32>
    %65 = arith.addf %53, %64 : vector<2x128xf32>
    %cst = arith.constant 1.000000e-07 : f32
    %66 = vector.broadcast %cst : f32 to vector<2x128xf32>
    %67 = arith.addf %65, %66 : vector<2x128xf32>
    %68 = tpu.reciprocal %67 {approx = true} : vector<2x128xf32> -> vector<2x128xf32>
    %69 = arith.mulf %67, %68 : vector<2x128xf32>
    %cst_18 = arith.constant 2.000000e+00 : f32
    %70 = vector.broadcast %cst_18 : f32 to vector<2x128xf32>
    %71 = arith.subf %70, %69 : vector<2x128xf32>
    %72 = arith.mulf %68, %71 : vector<2x128xf32>
    %73 = arith.mulf %57, %72 : vector<2x128xf32>
    %cst_19 = arith.constant 1.000000e+00 : f32
    %74 = vector.broadcast %cst_19 : f32 to vector<2x128xf32>
    %75 = arith.subf %73, %74 : vector<2x128xf32>
    %76 = arith.mulf %61, %72 : vector<2x128xf32>
    %cst_20 = arith.constant 1.000000e+00 : f32
    %77 = vector.broadcast %cst_20 : f32 to vector<2x128xf32>
    %78 = arith.subf %76, %77 : vector<2x128xf32>
    %cst_21 = arith.constant dense<0.000000e+00> : vector<2x256xf32>
    %79 = tpu.matmul %75, %2, %cst_21 {dimension_numbers = #tpu.dot_dimension_numbers<[1], [0], [0], [1], [0, 0, 1, 1], [], []>, precision = #tpu.contract_precision<fp32>} : vector<2x128xf32>, vector<128x256xf32>, vector<2x256xf32> -> vector<2x256xf32>
    %cst_22 = arith.constant dense<0.000000e+00> : vector<2x256xf32>
    %80 = tpu.matmul %78, %4, %cst_22 {dimension_numbers = #tpu.dot_dimension_numbers<[1], [0], [0], [1], [0, 0, 1, 1], [], []>, precision = #tpu.contract_precision<fp32>} : vector<2x128xf32>, vector<128x256xf32>, vector<2x256xf32> -> vector<2x256xf32>
    %81 = arith.addf %79, %80 : vector<2x256xf32>
    %c0_23 = arith.constant 0 : index
    %c0_24 = arith.constant 0 : index
    %c0_25 = arith.constant 0 : index
    %82 = vector.load %arg5[%c0_23, %c0_24, %c0_25] : memref<1x2x256xf32, #tpu.memory_space<vmem>>, vector<1x2x256xf32>
    %83 = vector.shape_cast %82 : vector<1x2x256xf32> to vector<2x256xf32>
    %84 = vector.shape_cast %81 : vector<2x256xf32> to vector<1x2x256xf32>
    tpu.vector_store %arg5[%c0_23, %c0_24, %c0_25], %84 {strides = array<i32>} : memref<1x2x256xf32, #tpu.memory_space<vmem>>, vector<1x2x256xf32>,
    return
  }
  func.func @transform_0(%arg0: i32, %arg1: i32) -> (i32, i32) {
    %c0_i32 = arith.constant 0 : i32
    %c0_i32_0 = arith.constant 0 : i32
    %c0_i32_1 = arith.constant 0 : i32
    return %c0_i32, %c0_i32_0 : i32, i32
  }
  func.func @transform_1(%arg0: i32, %arg1: i32) -> (i32, i32, i32) {
    %c0_i32 = arith.constant 0 : i32
    %c0_i32_0 = arith.constant 0 : i32
    %c0_i32_1 = arith.constant 0 : i32
    %c0_i32_2 = arith.constant 0 : i32
    return %c0_i32, %c0_i32_0, %c0_i32_1 : i32, i32, i32
  }
  func.func @transform_2(%arg0: i32, %arg1: i32) -> (i32, i32, i32, i32) {
    %c0_i32 = arith.constant 0 : i32
    %c0_i32_0 = arith.constant 0 : i32
    %c0_i32_1 = arith.constant 0 : i32
    return %arg0, %c0_i32, %arg1, %c0_i32_0 : i32, i32, i32, i32
  }
  func.func @transform_3(%arg0: i32, %arg1: i32) -> (i32, i32, i32) {
    %c0_i32 = arith.constant 0 : i32
    %c0_i32_0 = arith.constant 0 : i32
    return %arg0, %arg1, %c0_i32 : i32, i32, i32
  }
}

</mosaic_0001>

<bundles_post_ra>
// kernel: tpu_custom_call.1
= control target key start
LH: loop header
LB: loop body
LE: loop exit
PB: predicated region body
PF: predicated region fallthrough
CT: control target
= control target key end

     0   :  { %8 = vsyncpa [#allocation5], 0  ;;  %s4215_s0 = inlined_call_operand.hbm [shape: f32[2,12], index: 0, kind: input, shape index: {}]   ;;  %s4216_s1 = inlined_call_operand.hbm [shape: f32[2,128,256], index: 1, kind: input, shape index: {}]   ;;  %s4217_s2 = inlined_call_operand.hbm [shape: f32[2,4,2,128], index: 2, kind: input, shape index: {}]   ;;  %s4218_s3 = inlined_call_operand.hbm [shape: f32[2,2,256], index: 3, kind: output, shape index: {}]  }
   0x1   :  { %9 = vsyncpa [#allocation3], 0 }
   0x2   :  { %10 = vsyncpa [#allocation8], 0 }
   0x3   :  { %12 = vsyncpa [#allocation8 + $0x1], 0 }
   0x4   :  { %13 = vsyncpa [#allocation4], 0 }
   0x5   :  { %15 = vsyncpa [#allocation4 + $0x1], 0  ;;  %s2927_s12 = smov 0   ;;  %s2929_s13 = smov 0  }
   0x6   :  { %s2931_s14 = smov 0   ;;  %s2933_s15 = smov 0  }
   0x7   :  { %s2935_s16 = smov 0   ;;  %s2937_s17 = smov 0  }
   0x8 LB: > { %s2212_s18 = sadd.s32 4294967295, %s2896_s17   ;;  %s2213_s19 = sadd.s32 4294967294, %s2896_s17   ;;  %s2896_s17 = sphi %s2937_s17, %s21_s17   ;;  %s2892_s16 = sphi %s2935_s16, %s4773_s16   ;;  %s2888_s15 = sphi %s2933_s15, %s4772_s15   ;;  %s2884_s14 = sphi %s2931_s14, %s4771_s14   ;;  %s2880_s13 = sphi %s2929_s13, %s4770_s13   ;;  %s2876_s12 = sphi %s2927_s12, %s4769_s12  }
   0x9   : > { %s84_s20 = sadd.s32 1, %s2884_s14  ;;  %p91_p0 = scmp.ne.s32.totalorder %s2884_s14, %s2880_s13 }
   0xa   : > { %p92_p1 = scmp.eq.s32.totalorder %s2896_s17, 0  ;;  %p97_p2 = scmp.ne.s32.totalorder %s2880_s13, %s2876_s12 }
   0xb   : > { %p2965_p3 = scmp.eq.s32.totalorder %s2212_s18, 0  ;;  %p123_p4 = scmp.eq.s32.totalorder %s2212_s18, 1 }
   0xc   : > { %p93_p5 = por %p92_p1, %p91_p0  ;;  %p129_p6 = scmp.eq.s32.totalorder %s2213_s19, 1 }
   0xd   : > { %s4438_s21 = scalar_select %p2965_p3, 1, 0 }
   0xe   : > { %p2971_p7 = por %p2965_p3, %p97_p2  ;;  %p2975_p8 = por %p123_p4, %p91_p0 }
   0xf   : > { %p2979_p9 = por %p129_p6, %p97_p2  ;;  %p2214_p10 = scmp.ge.s32.totalorder %s2896_s17, 1 }
  0x10   : > { %s4439_s22 = scalar_select %p2971_p7, 1, 0 }
  0x11   : > { %s4440_s23 = scalar_select %p2975_p8, 1, 0 }
  0x12   : > { %s4441_s24 = scalar_select %p2979_p9, 1, 0 }
  0x13   : > { %p136_p11 = scmp.lt.s32.totalorder %s2896_s17, 3  ;;  %p2674_p1 = scmp.lt.s32.totalorder %s2896_s17, 2 }
  0x14   : > { %s2898_s27 = smov [#allocation6]   ;;  %p4444_p0 = scmp.ne.s32.totalorder %s4438_s21, 0 }
  0x15   : > { %p2986_p13 = pnand %p2214_p10, %p136_p11  ;;  %p2993_p7 = pnand %p2674_p1, %p93_p5 }
  0x16   : > { %s157_s28 = sshll.u32 %s2898_s27, 4  ;;  %s2735_s5 = scalar_lea.hbm %s4215_s0, 32  ;;  %s3003_s28 = int_to_ptr.vmem [resolvable:$true] %s157_s28 }
  0x17   : > { %p2657_p3 = pneg %p2986_p13  ;;  %p2736_p4 = scmp.ne.s32.totalorder %s4215_s0, %s2735_s5 }
  0x18   : > { %p2742_p10 = scmp.lt.u32.totalorder %s2735_s5, %s4215_s0 }
  0x19   : > { %p2999_p2 = pnand %p2657_p3, %p4444_p0 }
  0x1b   : > { %p2737_p5 = pneg %p2999_p2 }
  0x1d   : > { %p2738_p3 = pnand %p2737_p5, %p2736_p4 }
  0x1f   : > { %p2739_p6 = pneg %p2738_p3 }
  0x21   : > { %p2744_p11 = pnand %p2742_p10, %p2739_p6 }
  0x23   : > { %2747 = shalt.err (!%p2744_p11)
}
  0x24   : > { %s2899_s10 = smov [#allocation2]   ;;  %s2748_s30 = scalar_lea.hbm %s4216_s1, 8192 }
  0x25   : > { %2660 = dma.hbm_to_smem (!%p2999_p2), %s4215_s0, 32, %s2899_s10, [#allocation5]  }
  0x26   : > { %p2749_p1 = scmp.ne.s32.totalorder %s4216_s1, %s2748_s30  ;;  %p2755_p3 = scmp.lt.u32.totalorder %s2748_s30, %s4216_s1 }
  0x28   : > { %p2751_p0 = pnand %p2749_p1, %p2737_p5 }
  0x2a   : > { %p2752_p4 = pneg %p2751_p0 }
  0x2c   : > { %p2757_p6 = pnand %p2755_p3, %p2752_p4 }
  0x2e   : > { %2760 = shalt.err (!%p2757_p6)
}
  0x2f   : > { %s2761_s8 = scalar_lea.vmem %s3003_s28, 8192  ;;  %p2769_p9 = scmp.lt.s32.totalorder %s3003_s28, %s3003_s28 }
  0x30   : > { %p2762_p10 = scmp.ne.s32.totalorder %s3003_s28, %s2761_s8  ;;  %p2770_p1 = scmp.lt.s32.totalorder %s2761_s8, %s2761_s8 }
  0x32   : > { %p2764_p11 = pnand %p2762_p10, %p2737_p5  ;;  %p2771_p0 = por %p2770_p1, %p2769_p9 }
  0x34   : > { %p2765_p12 = pneg %p2764_p11 }
  0x36   : > { %p2772_p8 = pnand %p2771_p0, %p2765_p12 }
  0x38   : > { %2775 = shalt.err (!%p2772_p8)
}
  0x39   : > { %s2900_s9 = smov 256   ;;  %s2901_s10 = smov 16  }
  0x3a   : > { %2663 = dma.hbm_to_vmem [thread:$0]  (!%p2999_p2), %s4216_s1, 8192, %s3003_s28, [#allocation3], %s2900_s9, %s2900_s9, %s2901_s10  }
  0x3b   : > { %s33_s19 = sadd.s32 1, %s2892_s16  ;;  %s171_s27 = sand.u32 1, %s2884_s14  }
  0x3c   : > { %p35_p8 = scmp.ge.s32.totalorder %s33_s19, 2  ;;  %s2643_s30 = smul.u32 6, %s171_s27 }
  0x3d   : > { %s2235_s4 = sshll.u32 %s2892_s16, 7  ;;  %s3068_s10 = scalar_lea.sflag [#allocation8], %s171_s27 }
  0x3e   : > { %s4775_s19 = smov (%p35_p8, %s33_s19), 0  ;;  %s3057_s7 = scalar_lea.hbm %s4217_s2, %s2235_s4 }
  0x3f   : > { %s79_s29 = ssub.s32 %s2892_s16, %s4775_s19  ;;  %s175_s28 = scalar_lea.vmem [#allocation7], %s2643_s30 }
  0x40   : > { %s183_s8 = sshll.u32 %s175_s28, 4  ;;  %p82_p9 = scmp.eq.s32.totalorder %s79_s29, 0  ;;  %s3061_s8 = int_to_ptr.vmem [resolvable:$true] %s183_s8 }
  0x41   : > { %s2776_s11 = scalar_lea.hbm %s3057_s7, 96  ;;  %p2778_p2 = pneg %p2993_p7 }
  0x42   : > { %s3066_s9 = scalar_select %p82_p9, %s2884_s14, %s84_s20  }
  0x43   : > { %p2777_p12 = scmp.ne.s32.totalorder %s3057_s7, %s2776_s11  ;;  %s2781_s30 = scalar_lea.hbm %s4217_s2, 256 }
  0x44   : > { %p2782_p3 = scmp.lt.u32.totalorder %s3057_s7, %s4217_s2  ;;  %p2783_p6 = scmp.lt.u32.totalorder %s2781_s30, %s2776_s11 }
  0x45   : > { %p2779_p5 = pnand %p2778_p2, %p2777_p12  ;;  %p2785_p11 = scmp.lt.u32.totalorder %s2776_s11, %s3057_s7 }
  0x46   : > { %p2784_p10 = por %p2783_p6, %p2782_p3 }
  0x47   : > { %p2780_p4 = pneg %p2779_p5 }
  0x48   : > { %p2786_p1 = por %p2785_p11, %p2784_p10 }
  0x4a   : > { %p2787_p0 = pnand %p2786_p1, %p2780_p4 }
  0x4c   : > { %2790 = shalt.err (!%p2787_p0)
}
  0x4d   : > { %s2791_s20 = scalar_lea.vmem %s3061_s8, 96  ;;  %s2902_s27 = smov [#allocation7]  }
  0x4e   : > { %p2792_p8 = scmp.ne.s32.totalorder %s3061_s8, %s2791_s20  ;;  %s2796_s29 = sshll.u32 %s2902_s27, 4  ;;  %s2797_s29 = int_to_ptr.vmem [resolvable:$false] %s2796_s29 }
  0x4f   : > { %s2798_s28 = scalar_lea.vmem %s2797_s29, 192  ;;  %p2799_p5 = scmp.lt.s32.totalorder %s3061_s8, %s2797_s29 }
  0x50   : > { %p2794_p9 = pnand %p2792_p8, %p2778_p2  ;;  %p2800_p3 = scmp.lt.s32.totalorder %s2798_s28, %s2791_s20 }
  0x52   : > { %p2795_p12 = pneg %p2794_p9  ;;  %p2801_p6 = por %p2800_p3, %p2799_p5 }
  0x54   : > { %p2802_p10 = pnand %p2801_p6, %p2795_p12 }
  0x56   : > { %2805 = shalt.err (!%p2802_p10)
}
  0x57   : > { %s2903_s11 = smov 32   ;;  %s2904_s18 = smov 2  }
  0x58   : > { %2667 = dma.hbm_to_vmem [thread:$0]  (!%p2993_p7), %s3057_s7, 96, %s3061_s8, %s3068_s10, %s2903_s11, %s2903_s11, %s2904_s18  }
  0x59   : > { %195 = sbr.rel (%p2986_p13) target bundleno = 601 (0x259), region = 32 }
  0x60   : > { %p4446_p2 = scmp.ne.s32.totalorder %s4438_s21, 0 }
  0x62   : > { %2859 = dma.done.wait (%p4446_p2), [#allocation5], 32  }
  0x63   : > { %2861 = vsyncadd (%p4446_p2), [#allocation5], 4294967264 }
  0x64   : > { %2863 = dma.done.wait (%p4446_p2), [#allocation3], 8192  }
  0x65   : > { %2865 = vsyncadd (%p4446_p2), [#allocation3], 4294959104  ;;  %s3107_s4 = sand.u32 1, %s2880_s13   ;;  %p4447_p7 = scmp.ne.s32.totalorder %s4439_s22, 0 }
  0x66   : > { %s2644_s25 = smul.u32 6, %s3107_s4  ;;  %s206_s26 = scalar_lea.sflag [#allocation8], %s3107_s4 }
  0x68   : > { %s3111_s7 = scalar_lea.vmem [#allocation7], %s2644_s25 }
  0x69   : > { %2867 = dma.done.wait (%p4447_p7), %s206_s26, 96  }
  0x6a   : > { %2869 = vsyncadd (%p4447_p7), %s206_s26, 4294967200 }
  0x6b   : > { %214 = sfence }
  0x6c   : > { %v267_v0 = vld [vmem:[#allocation6 + $0x108] sm:$0xff]  ;;  %v269_v1 = vld [vmem:[#allocation6 + $0x118] sm:$0xff]  ;;  %v266_v7 = vld [vmem:[#allocation6 + $0x100] sm:$0xff]  ;;  %v4223_v9 = vmov 0.0   ;;  %s3265_s21 = sshll.u32 %s2888_s15, 7  ;;  %p4766_p4 = scmp.ne.s32.totalorder %s4440_s23, 0 }
  0x6d   : > { %v234_v2 = vld [vmem:[#allocation6 + $0x8] sm:$0xff]  ;;  %v366_v3 = vand.u32 4294901760, %v267_v0  ;;  %v370_v4 = vand.u32 4294901760, %v269_v1  ;;  %v236_v5 = vld [vmem:[#allocation6 + $0x18] sm:$0xff]  ;;  %v268_v8 = vld [vmem:[#allocation6 + $0x110] sm:$0xff]  ;;  %462 = vmatprep.mubr.f32.mxu1 %v4223_v9  ;;  %1317 = vmatprep.mubr.f32.mxu0 %v4223_v9  ;;  %v368_v11 = vand.u32 4294901760, %v266_v7 }
  0x6e   : > { %v1221_v6 = vand.u32 4294901760, %v234_v2  ;;  %v1225_v10 = vand.u32 4294901760, %v236_v5  ;;  %v372_v12 = vand.u32 4294901760, %v268_v8  ;;  %v233_v13 = vld [vmem:[#allocation6] sm:$0xff]  ;;  %v235_v14 = vld [vmem:[#allocation6 + $0x10] sm:$0xff]  ;;  %v271_v15 = vld [vmem:[#allocation6 + $0x128] sm:$0xff] }
  0x6f   : > { %v3119_v16 = vpack.c.bf16 %v370_v4, %v366_v3  ;;  %v3121_v17 = vsub.f32 %v267_v0, %v366_v3  ;;  %v3123_v18 = vsub.f32 %v269_v1, %v370_v4  ;;  %v273_v20 = vld [vmem:[#allocation6 + $0x138] sm:$0xff]  ;;  %v238_v21 = vld [vmem:[#allocation6 + $0x28] sm:$0xff]  ;;  %v3133_v26 = vsub.f32 %v266_v7, %v368_v11  ;;  %v270_v27 = vld [vmem:[#allocation6 + $0x120] sm:$0xff]  ;;  %s317_s22 = sadd.s32 4, %s3265_s21  ;;  %s321_s8 = sadd.s32 5, %s3265_s21 }
  0x70   : > { %v3125_v19 = vsub.f32 %v234_v2, %v1221_v6  ;;  %v240_v22 = vld [vmem:[#allocation6 + $0x38] sm:$0xff]  ;;  %v3127_v23 = vpack.c.bf16 %v1225_v10, %v1221_v6  ;;  %v3129_v24 = vsub.f32 %v236_v5, %v1225_v10  ;;  %v3131_v25 = vpack.c.bf16 %v372_v12, %v368_v11  ;;  %v272_v32 = vld [vmem:[#allocation6 + $0x130] sm:$0xff]  ;;  %v237_v37 = vld [vmem:[#allocation6 + $0x20] sm:$0xff]  ;;  %s326_s10 = sadd.s32 6, %s3265_s21  ;;  %s331_s30 = sadd.s32 8, %s3265_s21 }
  0x71   : > { %4448 = vst [vmem:[#allocation14_spill] sm:$0xff] %v3119_v16  ;;  %4449 = vst [vmem:[#allocation15_spill] sm:$0xff] %v3121_v17  ;;  %2238 = vmatprep.subr.bf16.mxu1 %v3119_v16  ;;  %v3136_v28 = vsub.f32 %v268_v8, %v372_v12  ;;  %v1223_v29 = vand.u32 4294901760, %v233_v13  ;;  %v1227_v30 = vand.u32 4294901760, %v235_v14  ;;  %v374_v31 = vand.u32 4294901760, %v271_v15  ;;  %v239_v38 = vld [vmem:[#allocation6 + $0x30] sm:$0xff] }
  0x72   : > { %4450 = vst [vmem:[#allocation16_spill] sm:$0xff] %v3123_v18  ;;  %4451 = vst [vmem:[#allocation17_spill] sm:$0xff] %v3125_v19  ;;  %2430 = vmatprep.subr.bf16.mxu0 %v3127_v23  ;;  %2240 = vmatpush1.bf16.msra.mxu1 %v3131_v25  ;;  %v378_v33 = vand.u32 4294901760, %v273_v20  ;;  %v1229_v34 = vand.u32 4294901760, %v238_v21  ;;  %v1233_v35 = vand.u32 4294901760, %v240_v22  ;;  %v376_v36 = vand.u32 4294901760, %v270_v27 }
  0x73   : > { %4452 = vst [vmem:[#allocation18_spill] sm:$0xff] %v3127_v23  ;;  %4453 = vst [vmem:[#allocation19_spill] sm:$0xff] %v3129_v24  ;;  %v3140_v39 = vpack.c.bf16 %v1227_v30, %v1223_v29  ;;  %v3142_v40 = vsub.f32 %v233_v13, %v1223_v29  ;;  %v3144_v41 = vsub.f32 %v235_v14, %v1227_v30  ;;  %v275_v43 = vld [vmem:[#allocation6 + $0x148] sm:$0xff]  ;;  %v277_v44 = vld [vmem:[#allocation6 + $0x158] sm:$0xff]  ;;  %v380_v52 = vand.u32 4294901760, %v272_v32  ;;  %s3301_s6 = sld [smem:[#allocation2 + %s317_s22]] }
  0x74   : > { %4454 = vst [vmem:[#allocation20_spill] sm:$0xff] %v3131_v25  ;;  %4455 = vst [vmem:[#allocation21_spill] sm:$0xff] %v3133_v26  ;;  %v3146_v42 = vsub.f32 %v271_v15, %v374_v31  ;;  %v242_v45 = vld [vmem:[#allocation6 + $0x48] sm:$0xff]  ;;  %v3148_v46 = vpack.c.bf16 %v378_v33, %v374_v31  ;;  %v3150_v47 = vsub.f32 %v273_v20, %v378_v33  ;;  %v244_v50 = vld [vmem:[#allocation6 + $0x58] sm:$0xff]  ;;  %v1231_v54 = vand.u32 4294901760, %v237_v37  ;;  %s3303_s5 = sld [smem:[#allocation2 + %s321_s8]] }
  0x75   : > { %4456 = vst [vmem:[#allocation22_spill] sm:$0xff] %v3136_v28  ;;  %4457 = vst [vmem:[#allocation23_spill] sm:$0xff] %v3140_v39  ;;  %v3152_v48 = vpack.c.bf16 %v1233_v35, %v1229_v34  ;;  %v3154_v49 = vsub.f32 %v238_v21, %v1229_v34  ;;  %2432 = vmatpush1.bf16.msra.mxu0 %v3140_v39  ;;  %v3157_v51 = vsub.f32 %v240_v22, %v1233_v35  ;;  %v274_v59 = vld [vmem:[#allocation6 + $0x140] sm:$0xff]  ;;  %v276_v60 = vld [vmem:[#allocation6 + $0x150] sm:$0xff]  ;;  %s3306_s20 = sld [smem:[#allocation2 + %s326_s10]]  ;;  %s335_s29 = sadd.s32 9, %s3265_s21 }
  0x76   : > { %4458 = vst [vmem:[#allocation24_spill] sm:$0xff] %v3142_v40  ;;  %4459 = vst [vmem:[#allocation25_spill] sm:$0xff] %v3144_v41  ;;  %v3159_v53 = vsub.f32 %v270_v27, %v376_v36  ;;  %2242 = vmatprep.subr.bf16.mxu1 %v3148_v46  ;;  %v1235_v55 = vand.u32 4294901760, %v239_v38  ;;  %v382_v56 = vand.u32 4294901760, %v275_v43  ;;  %v386_v57 = vand.u32 4294901760, %v277_v44  ;;  %v241_v1 = vld [vmem:[#allocation6 + $0x40] sm:$0xff] }
  0x77   : > { %4460 = vst [vmem:[#allocation26_spill] sm:$0xff] %v3148_v46  ;;  %4461 = vst [vmem:[#allocation27_spill] sm:$0xff] %v3152_v48  ;;  %2434 = vmatprep.subr.bf16.mxu0 %v3152_v48  ;;  %v1237_v58 = vand.u32 4294901760, %v242_v45  ;;  %v3163_v61 = vpack.c.bf16 %v380_v52, %v376_v36  ;;  %v3165_v62 = vsub.f32 %v272_v32, %v380_v52  ;;  %v1241_v0 = vand.u32 4294901760, %v244_v50  ;;  %v243_v2 = vld [vmem:[#allocation6 + $0x50] sm:$0xff]  ;;  %v279_v3 = vld [vmem:[#allocation6 + $0x168] sm:$0xff] }
  0x78   : > { %v3167_v63 = vsub.f32 %v237_v37, %v1231_v54  ;;  %v3169_v4 = vpack.c.bf16 %v1235_v55, %v1231_v54  ;;  %v3171_v5 = vsub.f32 %v239_v38, %v1235_v55  ;;  %v3173_v6 = vpack.c.bf16 %v386_v57, %v382_v56  ;;  %v281_v8 = vld [vmem:[#allocation6 + $0x178] sm:$0xff]  ;;  %v246_v10 = vld [vmem:[#allocation6 + $0x68] sm:$0xff]  ;;  %v278_v33 = vld [vmem:[#allocation6 + $0x160] sm:$0xff]  ;;  %s3308_s27 = sld [smem:[#allocation2 + %s331_s30]]  ;;  %s340_s28 = sadd.s32 10, %s3265_s21 }
  0x79   : > { %4462 = vst [vmem:[#allocation28_spill] sm:$0xff] %v3163_v61  ;;  %v3175_v7 = vsub.f32 %v275_v43, %v382_v56  ;;  %v248_v11 = vld [vmem:[#allocation6 + $0x78] sm:$0xff]  ;;  %2244 = vmatpush1.bf16.msra.mxu1 %v3163_v61  ;;  %v3178_v12 = vsub.f32 %v277_v44, %v386_v57  ;;  %v3180_v13 = vpack.c.bf16 %v1241_v0, %v1237_v58  ;;  %v384_v20 = vand.u32 4294901760, %v274_v59  ;;  %v280_v38 = vld [vmem:[#allocation6 + $0x170] sm:$0xff]  ;;  %v245_v43 = vld [vmem:[#allocation6 + $0x60] sm:$0xff]  ;;  %s349_s11 = sadd.s32 7, %s3265_s21 }
  0x7a   : > { %4463 = vst [vmem:[#allocation29_spill] sm:$0xff] %v3169_v4  ;;  %4464 = vst [vmem:[#allocation30_spill] sm:$0xff] %v3173_v6  ;;  %v3182_v14 = vsub.f32 %v242_v45, %v1237_v58  ;;  %v3184_v15 = vsub.f32 %v244_v50, %v1241_v0  ;;  %2436 = vmatpush1.bf16.msra.mxu0 %v3169_v4  ;;  %2246 = vmatprep.subr.bf16.mxu1 %v3173_v6  ;;  %v388_v21 = vand.u32 4294901760, %v276_v60  ;;  %v247_v44 = vld [vmem:[#allocation6 + $0x70] sm:$0xff]  ;;  %v283_v55 = vld [vmem:[#allocation6 + $0x188] sm:$0xff]  ;;  %s3340_s18 = sld [smem:[#allocation2 + %s335_s29]] }
  0x7b   : > { %4465 = vst [vmem:[#allocation31_spill] sm:$0xff] %v3180_v13  ;;  %v1239_v22 = vand.u32 4294901760, %v241_v1  ;;  %v1243_v27 = vand.u32 4294901760, %v243_v2  ;;  %2438 = vmatprep.subr.bf16.mxu0 %v3180_v13  ;;  %v390_v29 = vand.u32 4294901760, %v279_v3  ;;  %v394_v30 = vand.u32 4294901760, %v281_v8  ;;  %v285_v56 = vld [vmem:[#allocation6 + $0x198] sm:$0xff] }
  0x7c   : > { %4466 = vst [vmem:[#allocation32_spill] sm:$0xff] %v3184_v15  ;;  %v1245_v31 = vand.u32 4294901760, %v246_v10  ;;  %v1249_v32 = vand.u32 4294901760, %v248_v11  ;;  %v3189_v34 = vpack.c.bf16 %v388_v21, %v384_v20  ;;  %v3191_v35 = vsub.f32 %v274_v59, %v384_v20  ;;  %v250_v57 = vld [vmem:[#allocation6 + $0x88] sm:$0xff]  ;;  %v284_v9 = vld [vmem:[#allocation6 + $0x190] sm:$0xff]  ;;  %v289_v13 = vld [vmem:[#allocation6 + $0x1b8] sm:$0xff] }
  0x7d   : > { %v3193_v36 = vsub.f32 %v276_v60, %v388_v21  ;;  %v3195_v37 = vpack.c.bf16 %v1243_v27, %v1239_v22  ;;  %v3197_v45 = vsub.f32 %v241_v1, %v1239_v22  ;;  %v3199_v50 = vsub.f32 %v243_v2, %v1243_v27  ;;  %v252_v21 = vld [vmem:[#allocation6 + $0x98] sm:$0xff]  ;;  %v254_v48 = vld [vmem:[#allocation6 + $0xa8] sm:$0xff]  ;;  %v253_v46 = vld [vmem:[#allocation6 + $0xa0] sm:$0xff]  ;;  %s353_s25 = sadd.s32 11, %s3265_s21  ;;  %s3344_s26 = sld [smem:[#allocation2 + %s340_s28]] }
  0x7e   : > { %4467 = vst [vmem:[#allocation33_spill] sm:$0xff] %v3189_v34  ;;  %4468 = vst [vmem:[#allocation34_spill] sm:$0xff] %v3191_v35  ;;  %v3201_v52 = vpack.c.bf16 %v394_v30, %v390_v29  ;;  %v3203_v54 = vsub.f32 %v279_v3, %v390_v29  ;;  %2248 = vmatpush1.bf16.msra.mxu1 %v3189_v34  ;;  %v3207_v58 = vsub.f32 %v281_v8, %v394_v30  ;;  %v282_v30 = vld [vmem:[#allocation6 + $0x180] sm:$0xff]  ;;  %v287_v34 = vld [vmem:[#allocation6 + $0x1a8] sm:$0xff]  ;;  %s3346_s22 = sld [smem:[#allocation2 + %s349_s11]]  ;;  %s307_s8 = sadd.s32 1, %s3265_s21 }
  0x7f   : > { %4469 = vst [vmem:[#allocation35_spill] sm:$0xff] %v3193_v36  ;;  %4470 = vst [vmem:[#allocation36_spill] sm:$0xff] %v3195_v37  ;;  %2440 = vmatpush1.bf16.msra.mxu0 %v3195_v37  ;;  %v3209_v59 = vpack.c.bf16 %v1249_v32, %v1245_v31  ;;  %v3211_v60 = vsub.f32 %v246_v10, %v1245_v31  ;;  %v392_v0 = vand.u32 4294901760, %v278_v33  ;;  %v396_v2 = vand.u32 4294901760, %v280_v38  ;;  %v249_v10 = vld [vmem:[#allocation6 + $0x80] sm:$0xff]  ;;  %v291_v16 = vld [vmem:[#allocation6 + $0x1c8] sm:$0xff] }
  0x80   : > { %4471 = vst [vmem:[#allocation37_spill] sm:$0xff] %v3197_v45  ;;  %4472 = vst [vmem:[#allocation38_spill] sm:$0xff] %v3199_v50  ;;  %2250 = vmatprep.subr.bf16.mxu1 %v3201_v52  ;;  %v3214_v1 = vsub.f32 %v248_v11, %v1249_v32  ;;  %v1247_v3 = vand.u32 4294901760, %v245_v43  ;;  %v1251_v20 = vand.u32 4294901760, %v247_v44  ;;  %v398_v27 = vand.u32 4294901760, %v283_v55  ;;  %s312_s10 = sadd.s32 2, %s3265_s21 }
  0x81   : > { %4473 = vst [vmem:[#allocation39_spill] sm:$0xff] %v3201_v52  ;;  %4474 = vst [vmem:[#allocation40_spill] sm:$0xff] %v3209_v59  ;;  %2442 = vmatprep.subr.bf16.mxu0 %v3209_v59  ;;  %v3217_v22 = vsub.f32 %v278_v33, %v392_v0  ;;  %v402_v8 = vand.u32 4294901760, %v285_v56  ;;  %v1253_v29 = vand.u32 4294901760, %v250_v57  ;;  %v3219_v31 = vpack.c.bf16 %v396_v2, %v392_v0  ;;  %v251_v52 = vld [vmem:[#allocation6 + $0x90] sm:$0xff]  ;;  %s3363_s30 = sld [smem:[#allocation2 + %s353_s25]] }
  0x82   : > { %4475 = vst [vmem:[#allocation41_spill] sm:$0xff] %v3214_v1  ;;  %v3221_v37 = vsub.f32 %v280_v38, %v396_v2  ;;  %v3223_v11 = vpack.c.bf16 %v1251_v20, %v1247_v3  ;;  %v3225_v32 = vsub.f32 %v245_v43, %v1247_v3  ;;  %v3227_v59 = vsub.f32 %v247_v44, %v1251_v20  ;;  %s345_s29 = sadd.s32 3, %s3265_s21  ;;  %s3375_s28 = sld [smem:[#allocation2 + %s3265_s21]] }
  0x83   : > { %4476 = vst [vmem:[#allocation42_spill] sm:$0xff] %v3217_v22  ;;  %4477 = vst [vmem:[#allocation43_spill] sm:$0xff] %v3219_v31  ;;  %v3229_v33 = vpack.c.bf16 %v402_v8, %v398_v27  ;;  %v3231_v6 = vsub.f32 %v283_v55, %v398_v27  ;;  %v3233_v4 = vsub.f32 %v285_v56, %v402_v8  ;;  %2252 = vmatpush1.bf16.msra.mxu1 %v3219_v31  ;;  %v256_v55 = vld [vmem:[#allocation6 + $0xb8] sm:$0xff]  ;;  %v288_v31 = vld [vmem:[#allocation6 + $0x1b0] sm:$0xff]  ;;  %s3388_s21 = sld [smem:[#allocation2 + %s307_s8]] }
  0x84   : > { %4478 = vst [vmem:[#allocation44_spill] sm:$0xff] %v3221_v37  ;;  %4479 = vst [vmem:[#allocation45_spill] sm:$0xff] %v3223_v11  ;;  %2444 = vmatpush1.bf16.msra.mxu0 %v3223_v11  ;;  %v1257_v38 = vand.u32 4294901760, %v252_v21  ;;  %v3237_v0 = vsub.f32 %v250_v57, %v1253_v29  ;;  %v400_v43 = vand.u32 4294901760, %v282_v30  ;;  %v404_v2 = vand.u32 4294901760, %v284_v9  ;;  %v286_v57 = vld [vmem:[#allocation6 + $0x1a0] sm:$0xff] }
  0x85   : > { %4480 = vst [vmem:[#allocation46_spill] sm:$0xff] %v3225_v32  ;;  %4481 = vst [vmem:[#allocation47_spill] sm:$0xff] %v3227_v59  ;;  %2254 = vmatprep.subr.bf16.mxu1 %v3229_v33  ;;  %v1255_v3 = vand.u32 4294901760, %v249_v10  ;;  %v1259_v44 = vand.u32 4294901760, %v251_v52  ;;  %v406_v20 = vand.u32 4294901760, %v287_v34  ;;  %v410_v61 = vand.u32 4294901760, %v289_v13 }
  0x86   : > { %4482 = vst [vmem:[#allocation48_spill] sm:$0xff] %v3229_v33  ;;  %4483 = vst [vmem:[#allocation49_spill] sm:$0xff] %v3231_v6  ;;  %v3240_v27 = vpack.c.bf16 %v1257_v38, %v1253_v29  ;;  %v3242_v56 = vsub.f32 %v252_v21, %v1257_v38  ;;  %v3244_v8 = vpack.c.bf16 %v404_v2, %v400_v43  ;;  %v255_v29 = vld [vmem:[#allocation6 + $0xb0] sm:$0xff]  ;;  %v293_v21 = vld [vmem:[#allocation6 + $0x1d8] sm:$0xff]  ;;  %s3390_s11 = sld [smem:[#allocation2 + %s312_s10]] }
  0x87   : > { %4484 = vst [vmem:[#allocation50_spill] sm:$0xff] %v3233_v4  ;;  %4485 = vst [vmem:[#allocation51_spill] sm:$0xff] %v3237_v0  ;;  %v3246_v11 = vsub.f32 %v282_v30, %v400_v43  ;;  %v3248_v39 = vsub.f32 %v284_v9, %v404_v2  ;;  %v3250_v33 = vpack.c.bf16 %v1259_v44, %v1255_v3  ;;  %v1261_v9 = vand.u32 4294901760, %v254_v48  ;;  %s3397_s25 = sld [smem:[#allocation2 + %s345_s29]] }
  0x88   : > { %4486 = vst [vmem:[#allocation52_spill] sm:$0xff] %v3240_v27  ;;  %4487 = vst [vmem:[#allocation53_spill] sm:$0xff] %v3242_v56  ;;  %v3252_v25 = vsub.f32 %v249_v10, %v1255_v3  ;;  %v3254_v23 = vsub.f32 %v251_v52, %v1259_v44  ;;  %2446 = vmatprep.subr.bf16.mxu0 %v3240_v27  ;;  %2256 = vmatpush1.bf16.msra.mxu1 %v3244_v8  ;;  %v1265_v52 = vand.u32 4294901760, %v256_v55 }
  0x89   : > { %4488 = vst [vmem:[#allocation54_spill] sm:$0xff] %v3244_v8  ;;  %4489 = vst [vmem:[#allocation55_spill] sm:$0xff] %v3246_v11  ;;  %v3258_v30 = vpack.c.bf16 %v410_v61, %v406_v20  ;;  %v3260_v38 = vsub.f32 %v287_v34, %v406_v20  ;;  %v3262_v43 = vsub.f32 %v289_v13, %v410_v61  ;;  %2448 = vmatpush1.bf16.msra.mxu0 %v3250_v33  ;;  %v258_v20 = vld [vmem:[#allocation6 + $0xc8] sm:$0xff]  ;;  %v260_v8 = vld [vmem:[#allocation6 + $0xd8] sm:$0xff] }
  0x8a   : > { %4490 = vst [vmem:[#allocation56_spill] sm:$0xff] %v3248_v39  ;;  %4491 = vst [vmem:[#allocation57_spill] sm:$0xff] %v3250_v33  ;;  %v408_v10 = vand.u32 4294901760, %v286_v57  ;;  %v412_v2 = vand.u32 4294901760, %v288_v31  ;;  %v1263_v3 = vand.u32 4294901760, %v253_v46  ;;  %v3270_v34 = vsub.f32 %v254_v48, %v1261_v9 }
  0x8b   : > { %4492 = vst [vmem:[#allocation58_spill] sm:$0xff] %v3252_v25  ;;  %4493 = vst [vmem:[#allocation59_spill] sm:$0xff] %v3254_v23  ;;  %2258 = vmatprep.subr.bf16.mxu1 %v3258_v30  ;;  %v1267_v61 = vand.u32 4294901760, %v255_v29  ;;  %v414_v13 = vand.u32 4294901760, %v291_v16  ;;  %v418_v44 = vand.u32 4294901760, %v293_v21  ;;  %v3273_v27 = vpack.c.bf16 %v1265_v52, %v1261_v9  ;;  %v290_v23 = vld [vmem:[#allocation6 + $0x1c0] sm:$0xff] }
  0x8c   : > { %4494 = vst [vmem:[#allocation60_spill] sm:$0xff] %v3258_v30  ;;  %4495 = vst [vmem:[#allocation61_spill] sm:$0xff] %v3260_v38  ;;  %v3275_v33 = vsub.f32 %v256_v55, %v1265_v52  ;;  %v3279_v38 = vsub.f32 %v286_v57, %v408_v10  ;;  %v292_v25 = vld [vmem:[#allocation6 + $0x1d0] sm:$0xff]  ;;  %v257_v30 = vld [vmem:[#allocation6 + $0xc0] sm:$0xff]  ;;  %v3283_v48 = vsub.f32 %v288_v31, %v412_v2  ;;  %v1269_v31 = vand.u32 4294901760, %v258_v20 }
  0x8d   : > { %4496 = vst [vmem:[#allocation62_spill] sm:$0xff] %v3262_v43  ;;  %4497 = vst [vmem:[#allocation63_spill] sm:$0xff] %v3270_v34  ;;  %v3277_v43 = vpack.c.bf16 %v412_v2, %v408_v10  ;;  %v3285_v34 = vpack.c.bf16 %v1267_v61, %v1263_v3  ;;  %v3287_v39 = vsub.f32 %v253_v46, %v1263_v3  ;;  %v259_v55 = vld [vmem:[#allocation6 + $0xd0] sm:$0xff]  ;;  %v295_v52 = vld [vmem:[#allocation6 + $0x1e8] sm:$0xff]  ;;  %2450 = vmatprep.subr.bf16.mxu0 %v3273_v27 }
  0x8e   : > { %4498 = vst [vmem:[#allocation64_spill] sm:$0xff] %v3273_v27  ;;  %4499 = vst [vmem:[#allocation65_spill] sm:$0xff] %v3275_v33  ;;  %v3289_v9 = vsub.f32 %v255_v29, %v1267_v61  ;;  %v297_v33 = vld [vmem:[#allocation6 + $0x1f8] sm:$0xff]  ;;  %v3293_v57 = vpack.c.bf16 %v418_v44, %v414_v13  ;;  %v3295_v10 = vsub.f32 %v291_v16, %v414_v13  ;;  %v1273_v46 = vand.u32 4294901760, %v260_v8 }
  0x8f   : > { %4500 = vst [vmem:[#allocation66_spill] sm:$0xff] %v3277_v43  ;;  %4501 = vst [vmem:[#allocation67_spill] sm:$0xff] %v3279_v38  ;;  %2260 = vmatpush1.bf16.msra.mxu1 %v3277_v43  ;;  %v3297_v38 = vsub.f32 %v293_v21, %v418_v44  ;;  %2452 = vmatpush1.bf16.msra.mxu0 %v3285_v34  ;;  %v416_v29 = vand.u32 4294901760, %v290_v23  ;;  %v420_v2 = vand.u32 4294901760, %v292_v25  ;;  %v1271_v3 = vand.u32 4294901760, %v257_v30  ;;  %v262_v44 = vld [vmem:[#allocation6 + $0xe8] sm:$0xff] }
  0x90   : > { %4502 = vst [vmem:[#allocation68_spill] sm:$0xff] %v3283_v48  ;;  %4503 = vst [vmem:[#allocation69_spill] sm:$0xff] %v3285_v34  ;;  %2262 = vmatprep.subr.bf16.mxu1 %v3293_v57  ;;  %v3311_v16 = vsub.f32 %v258_v20, %v1269_v31  ;;  %v1275_v21 = vand.u32 4294901760, %v259_v55  ;;  %v422_v61 = vand.u32 4294901760, %v295_v52  ;;  %v426_v13 = vand.u32 4294901760, %v297_v33  ;;  %v264_v43 = vld [vmem:[#allocation6 + $0xf8] sm:$0xff] }
  0x91   : > { %4504 = vst [vmem:[#allocation70_spill] sm:$0xff] %v3287_v39  ;;  %4505 = vst [vmem:[#allocation71_spill] sm:$0xff] %v3289_v9  ;;  %v3314_v34 = vpack.c.bf16 %v1273_v46, %v1269_v31  ;;  %v3316_v27 = vsub.f32 %v260_v8, %v1273_v46  ;;  %v294_v9 = vld [vmem:[#allocation6 + $0x1e0] sm:$0xff]  ;;  %v296_v39 = vld [vmem:[#allocation6 + $0x1f0] sm:$0xff]  ;;  %v3324_v20 = vsub.f32 %v292_v25, %v420_v2  ;;  %v1277_v25 = vand.u32 4294901760, %v262_v44 }
  0x92   : > { %4506 = vst [vmem:[#allocation72_spill] sm:$0xff] %v3293_v57  ;;  %4507 = vst [vmem:[#allocation73_spill] sm:$0xff] %v3295_v10  ;;  %v3320_v10 = vsub.f32 %v290_v23, %v416_v29  ;;  %v261_v57 = vld [vmem:[#allocation6 + $0xe0] sm:$0xff]  ;;  %v3328_v48 = vsub.f32 %v257_v30, %v1271_v3  ;;  %v3330_v31 = vsub.f32 %v259_v55, %v1275_v21  ;;  %v263_v8 = vld [vmem:[#allocation6 + $0xf0] sm:$0xff]  ;;  %v1281_v30 = vand.u32 4294901760, %v264_v43 }
  0x93   : > { %4508 = vst [vmem:[#allocation74_spill] sm:$0xff] %v3297_v38  ;;  %4509 = vst [vmem:[#allocation75_spill] sm:$0xff] %v3311_v16  ;;  %v3318_v38 = vpack.c.bf16 %v420_v2, %v416_v29  ;;  %v3326_v16 = vpack.c.bf16 %v1275_v21, %v1271_v3  ;;  %2454 = vmatprep.subr.bf16.mxu0 %v3314_v34  ;;  %v3334_v23 = vpack.c.bf16 %v426_v13, %v422_v61 }
  0x94   : > { %4510 = vst [vmem:[#allocation76_spill] sm:$0xff] %v3314_v34  ;;  %4511 = vst [vmem:[#allocation77_spill] sm:$0xff] %v3316_v27  ;;  %v3336_v46 = vsub.f32 %v295_v52, %v422_v61  ;;  %v3338_v29 = vsub.f32 %v297_v33, %v426_v13  ;;  %v424_v55 = vand.u32 4294901760, %v294_v9  ;;  %v428_v2 = vand.u32 4294901760, %v296_v39 }
  0x95   : > { %4512 = vst [vmem:[#allocation78_spill] sm:$0xff] %v3318_v38  ;;  %4513 = vst [vmem:[#allocation79_spill] sm:$0xff] %v3326_v16  ;;  %2264 = vmatpush1.bf16.msra.mxu1 %v3318_v38  ;;  %2456 = vmatpush1.bf16.msra.mxu0 %v3326_v16  ;;  %v1279_v3 = vand.u32 4294901760, %v261_v57  ;;  %v3349_v33 = vsub.f32 %v262_v44, %v1277_v25  ;;  %v1283_v52 = vand.u32 4294901760, %v263_v8 }
  0x96   : > { %4514 = vst [vmem:[#allocation80_spill] sm:$0xff] %v3334_v23  ;;  %4515 = vst [vmem:[#allocation81_spill] sm:$0xff] %v3336_v46  ;;  %2266 = vmatprep.subr.bf16.mxu1 %v3334_v23  ;;  %v3355_v13 = vpack.c.bf16 %v1281_v30, %v1277_v25  ;;  %v3357_v16 = vsub.f32 %v264_v43, %v1281_v30  ;;  %v3359_v38 = vpack.c.bf16 %v428_v2, %v424_v55 }
  0x97   : > { %4516 = vst [vmem:[#allocation82_spill] sm:$0xff] %v3338_v29  ;;  %4517 = vst [vmem:[#allocation83_spill] sm:$0xff] %v3349_v33  ;;  %v3361_v34 = vsub.f32 %v294_v9, %v424_v55  ;;  %v3366_v44 = vsub.f32 %v296_v39, %v428_v2  ;;  %v3368_v21 = vpack.c.bf16 %v1283_v52, %v1279_v3  ;;  %v4526_v9 = vand.u32 4294901760, %v3121_v17  ;;  %v298_v55 = vld [vmem:[%s3111_s7] sm:$0x3] }
  0x98   : > { %4518 = vst [vmem:[#allocation84_spill] sm:$0xff] %v3355_v13  ;;  %4519 = vst [vmem:[#allocation85_spill] sm:$0xff] %v3357_v16  ;;  %v3370_v61 = vsub.f32 %v261_v57, %v1279_v3  ;;  %v3372_v43 = vsub.f32 %v263_v8, %v1283_v52  ;;  %2458 = vmatprep.subr.bf16.mxu0 %v3355_v13  ;;  %v4527_v25 = vand.u32 4294901760, %v3123_v18  ;;  %v319_v2 = vstv %s3301_s6  ;;  %s2236_s6 = sshll.u32 %s2888_s15, 6  ;;  %s2906_s15 = smov [#allocation9]  }
  0x99   : > { %4520 = vst [vmem:[#allocation86_spill] sm:$0xff] %v3359_v38  ;;  %4521 = vst [vmem:[#allocation87_spill] sm:$0xff] %v3361_v34  ;;  %2268 = vmatpush1.bf16.msra.mxu1 %v3359_v38  ;;  %v477_v39 = vsub.f32 %v3121_v17, %v4526_v9  ;;  %2460 = vmatpush1.bf16.msra.mxu0 %v3368_v21  ;;  %v323_v3 = vstv %s3303_s5  ;;  %v328_v52 = vstv %s3306_s20  ;;  %v333_v9 = vstv %s3308_s27  ;;  %s2810_s10 = sshll.u32 %s2906_s15, 4  ;;  %s2811_s10 = int_to_ptr.vmem [resolvable:$false] %s2810_s10 }
  0x9a   : > { %4522 = vst [vmem:[#allocation88_spill] sm:$0xff] %v3366_v44  ;;  %4523 = vst [vmem:[#allocation89_spill] sm:$0xff] %v3368_v21  ;;  %v489_v30 = vsub.f32 %v3123_v18, %v4527_v25  ;;  %v4528_v38 = vand.u32 4294901760, %v3125_v19  ;;  %v4529_v13 = vand.u32 4294901760, %v3129_v24  ;;  %v2224_v21 = vld [vmem:[%s3111_s7 + $0x2] sm:$0x3]  ;;  %v320_v17 = vmul.f32 %v319_v2, %v298_v55 }
  0x9b   : > { %4524 = vst [vmem:[#allocation90_spill] sm:$0xff] %v3370_v61  ;;  %4525 = vst [vmem:[#allocation91_spill] sm:$0xff] %v3372_v43  ;;  %v478_v25 = vand.u32 4294901760, %v477_v39  ;;  %v2225_v18 = vld [vmem:[%s3111_s7 + $0x4] sm:$0x3]  ;;  %v324_v43 = vmul.f32 %v2224_v21, %v323_v3  ;;  %v334_v44 = vmul.f32 %v333_v9, %v298_v55  ;;  %v337_v16 = vstv %s3340_s18  ;;  %s2223_s7 = sshll.u32 %s3107_s4, 2 }
  0x9c   : > { %v490_v57 = vand.u32 4294901760, %v489_v30  ;;  %v1332_v8 = vsub.f32 %v3125_v19, %v4528_v38  ;;  %v1344_v23 = vsub.f32 %v3129_v24, %v4529_v13  ;;  %v329_v61 = vmul.f32 %v2225_v18, %v328_v52  ;;  %s232_s5 = scalar_lea.vmem [#allocation9], %s2223_s7 }
  0x9d   : > { %v325_v33 = vadd.f32 %v324_v43, %v320_v17  ;;  %v338_v29 = vmul.f32 %v2224_v21, %v337_v16  ;;  %v342_v38 = vstv %s3344_s26  ;;  %v351_v19 = vstv %s3346_s22  ;;  %s2105_s20 = sshll.u32 %s232_s5, 4  ;;  %s4166_s26 = scalar_lea.hbm %s4218_s3, %s2236_s6  ;;  %s4168_s20 = int_to_ptr.vmem [resolvable:$true] %s2105_s20 }
  0x9e   : > { %v2269_v34 = vpack.c.bf16 %v490_v57, %v478_v25  ;;  %v1333_v39 = vand.u32 4294901760, %v1332_v8  ;;  %v1345_v30 = vand.u32 4294901760, %v1344_v23  ;;  %v343_v24 = vmul.f32 %v2225_v18, %v342_v38  ;;  %s2089_s22 = scalar_lea.sflag [#allocation4], %s3107_s4  ;;  %s2806_s8 = scalar_lea.vmem %s4168_s20, 64 }
  0x9f   : > { %v355_v46 = vstv %s3363_s30  ;;  %v4322_v2 = vand.u32 4294901760, %v3133_v26  ;;  %v330_v3 = vadd.f32 %v329_v61, %v325_v33  ;;  %v339_v52 = vadd.f32 %v338_v29, %v334_v44  ;;  %p2807_p13 = scmp.ne.s32.totalorder %s4168_s20, %s2806_s8  ;;  %s2812_s30 = scalar_lea.vmem %s2811_s10, 128 }
  0xa0   : > { %2270 = vmatprep.subr.bf16.mxu1 %v2269_v34  ;;  %v2461_v13 = vpack.c.bf16 %v1345_v30, %v1333_v39  ;;  %v4321_v57 = vand.u32 4294901760, %v3136_v28  ;;  %v305_v8 = vstv %s3375_s28  ;;  %v309_v23 = vstv %s3388_s21  ;;  %p2813_p0 = scmp.lt.s32.totalorder %s4168_s20, %s2811_s10  ;;  %p2814_p8 = scmp.lt.s32.totalorder %s2812_s30, %s2806_s8 }
  0xa1   : > { %v483_v17 = vsub.f32 %v3133_v26, %v4322_v2  ;;  %v306_v16 = vmul.f32 %v305_v8, %v298_v55  ;;  %v314_v43 = vstv %s3390_s11  ;;  %v344_v34 = vadd.f32 %v343_v24, %v339_v52  ;;  %p2808_p11 = pnand %p2807_p13, %p4766_p4 }
  0xa2   : > { %2462 = vmatprep.subr.bf16.mxu0 %v2461_v13  ;;  %v3419_v9 = vadd.f32 %v351_v19, %v330_v3  ;;  %v495_v25 = vsub.f32 %v3136_v28, %v4321_v57  ;;  %v310_v33 = vmul.f32 %v2224_v21, %v309_v23  ;;  %v315_v61 = vmul.f32 %v2225_v18, %v314_v43  ;;  %p2815_p9 = por %p2814_p8, %p2813_p0 }
  0xa3   : > { %v484_v29 = vand.u32 4294901760, %v483_v17  ;;  %v347_v44 = vstv %s3397_s25  ;;  %v4320_v39 = vand.u32 4294901760, %v3142_v40  ;;  %v356_v30 = vadd.f32 %v355_v46, %v344_v34  ;;  %p2809_p1 = pneg %p2808_p11 }
  0xa4   : > { %v496_v38 = vand.u32 4294901760, %v495_v25  ;;  %v311_v13 = vadd.f32 %v310_v33, %v306_v16  ;;  %v4319_v55 = vand.u32 4294901760, %v3144_v41  ;;  %v4335_v24 = vand.u32 4294901760, %v3146_v42 }
  0xa5   : > { %v1338_v19 = vsub.f32 %v3142_v40, %v4320_v39  ;;  %v4329_v3 = vand.u32 4294901760, %v3150_v47  ;;  %v4328_v21 = vand.u32 4294901760, %v3154_v49  ;;  %v357_v52 = vadd.f32 1e-07, %v356_v30  ;;  %p2816_p12 = pnand %p2815_p9, %p2809_p1 }
  0xa6   : > { %v3433_v18 = vpack.c.bf16 %v496_v38, %v484_v29  ;;  %v316_v8 = vadd.f32 %v315_v61, %v311_v13  ;;  %v1350_v46 = vsub.f32 %v3144_v41, %v4319_v55  ;;  %v501_v16 = vsub.f32 %v3146_v42, %v4335_v24 }
  0xa7   : > { %v1339_v17 = vand.u32 4294901760, %v1338_v19  ;;  %v513_v23 = vsub.f32 %v3150_v47, %v4329_v3  ;;  %v1356_v43 = vsub.f32 %v3154_v49, %v4328_v21  ;;  %2733 = vrcp.f32 %v357_v52 }
  0xa8   : > { %v3447_v34 = vadd.f32 %v347_v44, %v316_v8  ;;  %v1351_v25 = vand.u32 4294901760, %v1350_v46  ;;  %v4326_v33 = vand.u32 4294901760, %v3157_v51  ;;  %v502_v29 = vand.u32 4294901760, %v501_v16 }
  0xa9   : > { %v514_v61 = vand.u32 4294901760, %v513_v23  ;;  %v1357_v30 = vand.u32 4294901760, %v1356_v43  ;;  %v4324_v38 = vand.u32 4294901760, %v3159_v53  ;;  %v4323_v55 = vand.u32 4294901760, %v3165_v62 }
  0xaa   : > { %v3451_v13 = vpack.c.bf16 %v1351_v25, %v1339_v17  ;;  %v1368_v19 = vsub.f32 %v3157_v51, %v4326_v33  ;;  %v4325_v39 = vand.u32 4294901760, %v3167_v63  ;;  %v4327_v46 = vand.u32 4294901760, %v3171_v5 }
  0xab   : > { %v3458_v44 = vpack.c.bf16 %v514_v61, %v502_v29  ;;  %v507_v8 = vsub.f32 %v3159_v53, %v4324_v38  ;;  %v4330_v16 = vand.u32 4294901760, %v3175_v7  ;;  %v519_v23 = vsub.f32 %v3165_v62, %v4323_v55 }
  0xac   : > { %v1369_v17 = vand.u32 4294901760, %v1368_v19  ;;  %v1362_v43 = vsub.f32 %v3167_v63, %v4325_v39  ;;  %v4331_v25 = vand.u32 4294901760, %v3178_v12  ;;  %v1374_v61 = vsub.f32 %v3171_v5, %v4327_v46 }
  0xad   : > { %v508_v29 = vand.u32 4294901760, %v507_v8  ;;  %v525_v57 = vsub.f32 %v3175_v7, %v4330_v16  ;;  %v4332_v19 = vand.u32 4294901760, %v3182_v14  ;;  %v520_v55 = vand.u32 4294901760, %v519_v23 }
  0xae   : > { %v3479_v2 = vpack.c.bf16 %v1369_v17, %v1357_v30  ;;  %v1363_v38 = vand.u32 4294901760, %v1362_v43  ;;  %v537_v39 = vsub.f32 %v3178_v12, %v4331_v25  ;;  %v1375_v33 = vand.u32 4294901760, %v1374_v61 }
  0xaf   : > { %v526_v8 = vand.u32 4294901760, %v525_v57  ;;  %v1380_v46 = vsub.f32 %v3182_v14, %v4332_v19  ;;  %v4333_v21 = vand.u32 4294901760, %v3184_v15  ;;  %v3488_v3 = vpack.c.bf16 %v520_v55, %v508_v29 }
  0xb0   : > { %v538_v16 = vand.u32 4294901760, %v537_v39  ;;  %v4334_v30 = vand.u32 4294901760, %v3191_v35  ;;  %v4338_v17 = vand.u32 4294901760, %v3193_v36  ;;  %v3492_v23 = vpack.c.bf16 %v1375_v33, %v1363_v38 }
  0xb1   : > { %v1381_v43 = vand.u32 4294901760, %v1380_v46  ;;  %v1392_v57 = vsub.f32 %v3184_v15, %v4333_v21  ;;  %v4341_v61 = vand.u32 4294901760, %v3197_v45  ;;  %v2734_v25 = vpop.eup %2733  ;;  %v4342_v33 = vand.u32 4294901760, %v3199_v50 }
  0xb2   : > { %v3498_v19 = vpack.c.bf16 %v538_v16, %v526_v8  ;;  %v531_v39 = vsub.f32 %v3191_v35, %v4334_v30  ;;  %v543_v55 = vsub.f32 %v3193_v36, %v4338_v17  ;;  %v359_v38 = vmul.f32 %v2734_v25, %v357_v52 }
  0xb3   : > { %v1393_v46 = vand.u32 4294901760, %v1392_v57  ;;  %v1386_v29 = vsub.f32 %v3197_v45, %v4341_v61  ;;  %v4347_v21 = vand.u32 4294901760, %v3203_v54  ;;  %v1398_v30 = vsub.f32 %v3199_v50, %v4342_v33 }
  0xb4   : > { %v532_v16 = vand.u32 4294901760, %v531_v39  ;;  %v544_v8 = vand.u32 4294901760, %v543_v55  ;;  %v4345_v24 = vand.u32 4294901760, %v3207_v58  ;;  %v360_v35 = vsub.f32 2.0, %v359_v38 }
  0xb5   : > { %v3515_v17 = vpack.c.bf16 %v1393_v46, %v1381_v43  ;;  %v1387_v36 = vand.u32 4294901760, %v1386_v29  ;;  %v549_v52 = vsub.f32 %v3203_v54, %v4347_v21  ;;  %v1399_v61 = vand.u32 4294901760, %v1398_v30 }
  0xb6   : > { %v3520_v57 = vpack.c.bf16 %v544_v8, %v532_v16  ;;  %v561_v39 = vsub.f32 %v3207_v58, %v4345_v24  ;;  %v4346_v55 = vand.u32 4294901760, %v3211_v60  ;;  %v361_v33 = vmul.f32 %v2734_v25, %v360_v35 }
  0xb7   : > { %v550_v50 = vand.u32 4294901760, %v549_v52  ;;  %v4348_v38 = vand.u32 4294901760, %v3214_v1  ;;  %v4349_v43 = vand.u32 4294901760, %v3217_v22  ;;  %v3528_v46 = vpack.c.bf16 %v1399_v61, %v1387_v36 }
  0xb8   : > { %v562_v29 = vand.u32 4294901760, %v561_v39  ;;  %v1404_v16 = vsub.f32 %v3211_v60, %v4346_v55  ;;  %v4350_v30 = vand.u32 4294901760, %v3221_v37  ;;  %v364_v8 = vmul.f32 %v361_v33, %v3419_v9 }
  0xb9   : > { %v362_v24 = vmul.f32 %v361_v33, %v3447_v34  ;;  %v1416_v35 = vsub.f32 %v3214_v1, %v4348_v38  ;;  %v555_v36 = vsub.f32 %v3217_v22, %v4349_v43  ;;  %v4351_v39 = vand.u32 4294901760, %v3225_v32 }
  0xba   : > { %v3542_v25 = vpack.c.bf16 %v562_v29, %v550_v50  ;;  %v1405_v61 = vand.u32 4294901760, %v1404_v16  ;;  %v567_v52 = vsub.f32 %v3221_v37, %v4350_v30  ;;  %v2228_v9 = vadd.f32 -1.0, %v364_v8  ;;  %v4536_v37 = vld [vmem:[#allocation59_spill] sm:$0xff] }
  0xbb   : > { %v2227_v55 = vadd.f32 -1.0, %v362_v24  ;;  %v1417_v34 = vand.u32 4294901760, %v1416_v35  ;;  %v556_v33 = vand.u32 4294901760, %v555_v36  ;;  %v1410_v38 = vsub.f32 %v3225_v32, %v4351_v39 }
  0xbc   : > { %v568_v21 = vand.u32 4294901760, %v567_v52  ;;  %v4354_v43 = vand.u32 4294901760, %v3227_v59  ;;  %v4355_v50 = vand.u32 4294901760, %v3231_v6  ;;  %v3553_v29 = vand.u32 4294901760, %v2228_v9 }
  0xbd   : > { %v3555_v16 = vand.u32 4294901760, %v2227_v55  ;;  %v3557_v30 = vpack.c.bf16 %v1417_v34, %v1405_v61  ;;  %v4360_v8 = vand.u32 4294901760, %v3233_v4  ;;  %v1411_v35 = vand.u32 4294901760, %v1410_v38 }
  0xbe   : > { %4530 = vst [vmem:[#allocation92_spill] sm:$0xff] %v3553_v29  ;;  %v3560_v24 = vpack.c.bf16 %v568_v21, %v556_v33  ;;  %v1422_v36 = vsub.f32 %v3227_v59, %v4354_v43  ;;  %v573_v52 = vsub.f32 %v3231_v6, %v4355_v50  ;;  %v3569_v39 = vsub.f32 %v2228_v9, %v3553_v29 }
  0xbf   : > { %4531 = vst [vmem:[#allocation93_spill] sm:$0xff] %v3555_v16  ;;  %v3572_v32 = vsub.f32 %v2227_v55, %v3555_v16  ;;  %v585_v21 = vsub.f32 %v3233_v4, %v4360_v8  ;;  %v4363_v38 = vand.u32 4294901760, %v3237_v0  ;;  %v4368_v33 = vand.u32 4294901760, %v3242_v56  ;;  %v4534_v8 = vld [vmem:[#allocation56_spill] sm:$0xff] }
  0xc0   : > { %4532 = vst [vmem:[#allocation94_spill] sm:$0xff] %v3569_v39  ;;  %v1423_v61 = vand.u32 4294901760, %v1422_v36  ;;  %v574_v34 = vand.u32 4294901760, %v573_v52  ;;  %v4369_v43 = vand.u32 4294901760, %v3246_v11  ;;  %v4380_v50 = vand.u32 4294901760, %v3569_v39 }
  0xc1   : > { %4533 = vst [vmem:[#allocation95_spill] sm:$0xff] %v3572_v32  ;;  %v4385_v9 = vand.u32 4294901760, %v3572_v32  ;;  %v586_v29 = vand.u32 4294901760, %v585_v21  ;;  %v1428_v55 = vsub.f32 %v3237_v0, %v4363_v38  ;;  %v1440_v36 = vsub.f32 %v3242_v56, %v4368_v33 }
  0xc2   : > { %v3585_v16 = vpack.c.bf16 %v1423_v61, %v1411_v35  ;;  %v579_v52 = vsub.f32 %v3246_v11, %v4369_v43  ;;  %v4389_v4 = vand.u32 4294901760, %v4534_v8  ;;  %v466_v21 = vsub.f32 %v3569_v39, %v4380_v50  ;;  %v4535_v43 = vld [vmem:[#allocation58_spill] sm:$0xff]  ;;  %v4537_v50 = vld [vmem:[#allocation61_spill] sm:$0xff] }
  0xc3   : > { %v1321_v38 = vsub.f32 %v3572_v32, %v4385_v9  ;;  %v3600_v35 = vpack.c.bf16 %v586_v29, %v574_v34  ;;  %v1429_v61 = vand.u32 4294901760, %v1428_v55  ;;  %v1441_v0 = vand.u32 4294901760, %v1440_v36  ;;  %v4538_v34 = vld [vmem:[#allocation62_spill] sm:$0xff] }
  0xc4   : > { %v580_v6 = vand.u32 4294901760, %v579_v52  ;;  %v591_v33 = vsub.f32 %v4534_v8, %v4389_v4  ;;  %v4387_v11 = vand.u32 4294901760, %v4535_v43  ;;  %v467_v56 = vand.u32 4294901760, %v466_v21  ;;  %v4539_v52 = vld [vmem:[#allocation63_spill] sm:$0xff]  ;;  %v4540_v21 = vld [vmem:[#allocation65_spill] sm:$0xff] }
  0xc5   : > { %v1322_v59 = vand.u32 4294901760, %v1321_v38  ;;  %v4386_v22 = vand.u32 4294901760, %v4536_v37  ;;  %v4388_v39 = vand.u32 4294901760, %v4537_v50  ;;  %v3608_v1 = vpack.c.bf16 %v1441_v0, %v1429_v61 }
  0xc6   : > { %v592_v9 = vand.u32 4294901760, %v591_v33  ;;  %v1434_v29 = vsub.f32 %v4535_v43, %v4387_v11  ;;  %v4390_v55 = vand.u32 4294901760, %v4538_v34  ;;  %468 = vmatmul.mubr.f32.vlgmr.msra.gmra.mrb[0].mxu1 %v467_v56  ;;  %v4393_v0 = vand.u32 4294901760, %v4539_v52 }
  0xc7   : > { %1323 = vmatmul.mubr.f32.vlgmr.msra.gmra.mrb[0].mxu0 %v1322_v59  ;;  %v1446_v36 = vsub.f32 %v4536_v37, %v4386_v22  ;;  %v597_v38 = vsub.f32 %v4537_v50, %v4388_v39  ;;  %v4397_v33 = vand.u32 4294901760, %v4540_v21  ;;  %2272 = vmatpush1.bf16.msra.mxu1 %v3433_v18  ;;  %v4541_v22 = vld [vmem:[#allocation67_spill] sm:$0xff] }
  0xc8   : > { %2464 = vmatpush1.bf16.msra.mxu0 %v3451_v13  ;;  %v3624_v61 = vpack.c.bf16 %v592_v9, %v580_v6  ;;  %v1435_v56 = vand.u32 4294901760, %v1434_v29  ;;  %v609_v59 = vsub.f32 %v4538_v34, %v4390_v55  ;;  %v4396_v11 = vand.u32 4294901760, %v4541_v22  ;;  %2274 = vmatprep.subr.bf16.mxu1 %v3458_v44  ;;  %v4542_v29 = vld [vmem:[#allocation68_spill] sm:$0xff]  ;;  %v4543_v44 = vld [vmem:[#allocation70_spill] sm:$0xff] }
  0xc9   : > { %2466 = vmatprep.subr.bf16.mxu0 %v3479_v2  ;;  %v1447_v39 = vand.u32 4294901760, %v1446_v36  ;;  %v598_v4 = vand.u32 4294901760, %v597_v38  ;;  %v1452_v18 = vsub.f32 %v4539_v52, %v4393_v0  ;;  %v1464_v6 = vsub.f32 %v4540_v21, %v4397_v33  ;;  %v4545_v52 = vld [vmem:[#allocation71_spill] sm:$0xff]  ;;  %v4579_v21 = vld [vmem:[#allocation82_spill] sm:$0xff] }
  0xca   : > { %v610_v13 = vand.u32 4294901760, %v609_v59  ;;  %v603_v9 = vsub.f32 %v4541_v22, %v4396_v11  ;;  %v4398_v55 = vand.u32 4294901760, %v4542_v29  ;;  %v4401_v32 = vand.u32 4294901760, %v4543_v44  ;;  %v4581_v22 = vld [vmem:[#allocation85_spill] sm:$0xff] }
  0xcb   : > { %v4544_v2 = vmov 0.0   ;;  %v3645_v36 = vpack.c.bf16 %v1447_v39, %v1435_v56  ;;  %v1453_v38 = vand.u32 4294901760, %v1452_v18  ;;  %v1465_v0 = vand.u32 4294901760, %v1464_v6  ;;  %2276 = vmatpush1.bf16.msra.mxu1 %v3488_v3  ;;  %v4547_v18 = vld [vmem:[#allocation74_spill] sm:$0xff] }
  0xcc   : > { %698 = vmatprep.mubr.f32.mxu1 %v4544_v2  ;;  %1553 = vmatprep.mubr.f32.mxu0 %v4544_v2  ;;  %v4406_v34 = vand.u32 4294901760, %v4545_v52  ;;  %v3650_v59 = vpack.c.bf16 %v610_v13, %v598_v4  ;;  %v604_v11 = vand.u32 4294901760, %v603_v9  ;;  %v615_v33 = vsub.f32 %v4542_v29, %v4398_v55  ;;  %v4546_v4 = vld [vmem:[#allocation73_spill] sm:$0xff]  ;;  %v4548_v55 = vld [vmem:[#allocation75_spill] sm:$0xff] }
  0xcd   : > { %2468 = vmatpush1.bf16.msra.mxu0 %v3492_v23  ;;  %v1458_v39 = vsub.f32 %v4543_v44, %v4401_v32  ;;  %2278 = vmatprep.subr.bf16.mxu1 %v3498_v19  ;;  %v2481_v56 = vpack.c.bf16 %v1465_v0, %v1453_v38  ;;  %v4403_v23 = vand.u32 4294901760, %v4546_v4  ;;  %v4402_v6 = vand.u32 4294901760, %v4547_v18 }
  0xce   : > { %2470 = vmatprep.subr.bf16.mxu0 %v3515_v17  ;;  %v1470_v3 = vsub.f32 %v4545_v52, %v4406_v34  ;;  %v616_v13 = vand.u32 4294901760, %v615_v33  ;;  %v4404_v2 = vand.u32 4294901760, %v4548_v55  ;;  %v4405_v29 = vand.u32 4294901760, %v3316_v27 }
  0xcf   : > { %v1459_v9 = vand.u32 4294901760, %v1458_v39  ;;  %v621_v19 = vsub.f32 %v4546_v4, %v4403_v23  ;;  %v633_v17 = vsub.f32 %v4547_v18, %v4402_v6  ;;  %v4411_v0 = vand.u32 4294901760, %v3320_v10  ;;  %2280 = vmatpush1.bf16.msra.mxu1 %v3520_v57 }
  0xd0   : > { %v1471_v32 = vand.u32 4294901760, %v1470_v3  ;;  %v2291_v33 = vpack.c.bf16 %v616_v13, %v604_v11  ;;  %v1476_v38 = vsub.f32 %v4548_v55, %v4404_v2  ;;  %v1488_v39 = vsub.f32 %v3316_v27, %v4405_v29  ;;  %2282 = vmatprep.subr.bf16.mxu1 %v3542_v25 }
  0xd1   : > { %2472 = vmatpush1.bf16.msra.mxu0 %v3528_v46  ;;  %v4410_v3 = vand.u32 4294901760, %v3324_v20  ;;  %v622_v23 = vand.u32 4294901760, %v621_v19  ;;  %v634_v57 = vand.u32 4294901760, %v633_v17  ;;  %v627_v11 = vsub.f32 %v3320_v10, %v4411_v0 }
  0xd2   : > { %2474 = vmatprep.subr.bf16.mxu0 %v3557_v30  ;;  %v2483_v6 = vpack.c.bf16 %v1471_v32, %v1459_v9  ;;  %v1477_v46 = vand.u32 4294901760, %v1476_v38  ;;  %v1489_v13 = vand.u32 4294901760, %v1488_v39  ;;  %v4409_v29 = vand.u32 4294901760, %v3328_v48  ;;  %v4549_v30 = vld [vmem:[#allocation81_spill] sm:$0xff]  ;;  %v4550_v38 = vld [vmem:[#allocation82_spill] sm:$0xff] }
  0xd3   : > { %v639_v2 = vsub.f32 %v3324_v20, %v4410_v3  ;;  %v2293_v34 = vpack.c.bf16 %v634_v57, %v622_v23  ;;  %v628_v27 = vand.u32 4294901760, %v627_v11  ;;  %v4412_v25 = vand.u32 4294901760, %v3330_v31  ;;  %2284 = vmatpush1.bf16.msra.mxu1 %v3560_v24  ;;  %v4551_v24 = vld [vmem:[#allocation83_spill] sm:$0xff]  ;;  %v4552_v57 = vld [vmem:[#allocation85_spill] sm:$0xff] }
  0xd4   : > { %v4413_v32 = vand.u32 4294901760, %v4549_v30  ;;  %v2485_v9 = vpack.c.bf16 %v1489_v13, %v1477_v46  ;;  %v1482_v17 = vsub.f32 %v3328_v48, %v4409_v29  ;;  %v4414_v39 = vand.u32 4294901760, %v4550_v38  ;;  %2286 = vmatprep.subr.bf16.mxu1 %v3600_v35  ;;  %v4553_v29 = vld [vmem:[#allocation87_spill] sm:$0xff] }
  0xd5   : > { %2476 = vmatpush1.bf16.msra.mxu0 %v3585_v16  ;;  %v640_v19 = vand.u32 4294901760, %v639_v2  ;;  %v1494_v23 = vsub.f32 %v3330_v31, %v4412_v25  ;;  %v4415_v2 = vand.u32 4294901760, %v4551_v24  ;;  %v4418_v11 = vand.u32 4294901760, %v4552_v57 }
  0xd6   : > { %2478 = vmatprep.subr.bf16.mxu0 %v3608_v1  ;;  %v645_v16 = vsub.f32 %v4549_v30, %v4413_v32  ;;  %v1483_v13 = vand.u32 4294901760, %v1482_v17  ;;  %v657_v35 = vsub.f32 %v4550_v38, %v4414_v39  ;;  %v4421_v1 = vand.u32 4294901760, %v4553_v29  ;;  %v4554_v17 = vld [vmem:[#allocation88_spill] sm:$0xff] }
  0xd7   : > { %v2295_v46 = vpack.c.bf16 %v640_v19, %v628_v27  ;;  %v1495_v3 = vand.u32 4294901760, %v1494_v23  ;;  %v1500_v25 = vsub.f32 %v4551_v24, %v4415_v2  ;;  %v1512_v32 = vsub.f32 %v4552_v57, %v4418_v11  ;;  %2288 = vmatpush1.bf16.msra.mxu1 %v3624_v61  ;;  %v4556_v11 = vld [vmem:[#allocation91_spill] sm:$0xff] }
  0xd8   : > { %v646_v0 = vand.u32 4294901760, %v645_v16  ;;  %v658_v27 = vand.u32 4294901760, %v657_v35  ;;  %v651_v19 = vsub.f32 %v4553_v29, %v4421_v1  ;;  %v4422_v23 = vand.u32 4294901760, %v4554_v17  ;;  %v4555_v16 = vld [vmem:[#allocation90_spill] sm:$0xff]  ;;  %2290 = vmatprep.subr.bf16.mxu1 %v3650_v59 }
  0xd9   : > { %2480 = vmatpush1.bf16.msra.mxu0 %v3645_v36  ;;  %v4424_v39 = vand.u32 4294901760, %v4555_v16  ;;  %v2487_v2 = vpack.c.bf16 %v1495_v3, %v1483_v13  ;;  %v1501_v24 = vand.u32 4294901760, %v1500_v25  ;;  %v1513_v38 = vand.u32 4294901760, %v1512_v32  ;;  %v4558_v3 = vld [vmem:[#allocation16_spill] sm:$0xff]  ;;  %v4559_v32 = vld [vmem:[#allocation17_spill] sm:$0xff]  ;;  %v4560_v13 = vld [vmem:[#allocation19_spill] sm:$0xff] }
  0xda   : > { %2482 = vmatprep.subr.bf16.mxu0 %v2481_v56  ;;  %v4423_v57 = vand.u32 4294901760, %v4556_v11  ;;  %v2297_v61 = vpack.c.bf16 %v658_v27, %v646_v0  ;;  %v652_v30 = vand.u32 4294901760, %v651_v19  ;;  %v663_v36 = vsub.f32 %v4554_v17, %v4422_v23  ;;  %v4557_v56 = vld [vmem:[#allocation15_spill] sm:$0xff] }
  0xdb   : > { %v1506_v35 = vsub.f32 %v4555_v16, %v4424_v39  ;;  %v2489_v1 = vpack.c.bf16 %v1513_v38, %v1501_v24  ;;  %v2301_v25 = vpack.c.bf16 %v4558_v3, %v4557_v56  ;;  %v2493_v0 = vpack.c.bf16 %v4560_v13, %v4559_v32  ;;  %2292 = vmatpush1.bf16.msra.mxu1 %v2291_v33  ;;  %v4565_v32 = vld [vmem:[#allocation42_spill] sm:$0xff]  ;;  %v4573_v13 = vld [vmem:[#allocation55_spill] sm:$0xff]  ;;  %v4578_v3 = vld [vmem:[#allocation81_spill] sm:$0xff] }
  0xdc   : > { %v1518_v59 = vsub.f32 %v4556_v11, %v4423_v57  ;;  %v664_v27 = vand.u32 4294901760, %v663_v36  ;;  %v2303_v23 = vpack.c.bf16 %v3136_v28, %v3133_v26  ;;  %v2495_v38 = vpack.c.bf16 %v3144_v41, %v3142_v40  ;;  %2294 = vmatprep.subr.bf16.mxu1 %v2293_v34  ;;  %v4567_v56 = vld [vmem:[#allocation46_spill] sm:$0xff]  ;;  %v4571_v26 = vld [vmem:[#allocation51_spill] sm:$0xff]  ;;  %v4572_v28 = vld [vmem:[#allocation53_spill] sm:$0xff] }
  0xdd   : > { %2484 = vmatpush1.bf16.msra.mxu0 %v2483_v6  ;;  %v1507_v19 = vand.u32 4294901760, %v1506_v35  ;;  %v2305_v57 = vpack.c.bf16 %v3150_v47, %v3146_v42  ;;  %v2497_v39 = vpack.c.bf16 %v3157_v51, %v3154_v49  ;;  %v2307_v6 = vpack.c.bf16 %v3165_v62, %v3159_v53  ;;  %v4570_v40 = vld [vmem:[#allocation50_spill] sm:$0xff]  ;;  %v4575_v35 = vld [vmem:[#allocation63_spill] sm:$0xff] }
  0xde   : > { %2486 = vmatprep.subr.bf16.mxu0 %v2485_v9  ;;  %v1519_v24 = vand.u32 4294901760, %v1518_v59  ;;  %v2299_v33 = vpack.c.bf16 %v664_v27, %v652_v30  ;;  %v2499_v36 = vpack.c.bf16 %v3171_v5, %v3167_v63  ;;  %v2501_v34 = vpack.c.bf16 %v3184_v15, %v3182_v14  ;;  %v4561_v59 = vld [vmem:[#allocation34_spill] sm:$0xff]  ;;  %v4564_v30 = vld [vmem:[#allocation41_spill] sm:$0xff]  ;;  %v4568_v15 = vld [vmem:[#allocation47_spill] sm:$0xff] }
  0xdf   : > { %2296 = vmatpush1.bf16.msra.mxu1 %v2295_v46  ;;  %v4574_v27 = vld [vmem:[#allocation62_spill] sm:$0xff]  ;;  %v2331_v45 = vpack.c.bf16 %v4554_v17, %v4553_v29  ;;  %v2523_v8 = vpack.c.bf16 %v4556_v11, %v4555_v16  ;;  %v4586_v41 = vand.u32 4294901760, %v3154_v49  ;;  %v4588_v17 = vand.u32 4294901760, %v3159_v53 }
  0xe0   : > { %v2491_v9 = vpack.c.bf16 %v1519_v24, %v1507_v19  ;;  %2298 = vmatprep.subr.bf16.mxu1 %v2297_v61  ;;  %v4569_v24 = vld [vmem:[#allocation49_spill] sm:$0xff]  ;;  %v4584_v19 = vld [vmem:[#allocation92_spill] sm:$0xff]  ;;  %v4589_v11 = vand.u32 4294901760, %v3165_v62  ;;  %v4592_v49 = vand.u32 4294901760, %v3175_v7  ;;  %v4595_v53 = vand.u32 4294901760, %v3182_v14 }
  0xe1   : > { %2488 = vmatpush1.bf16.msra.mxu0 %v2487_v2  ;;  %v4577_v2 = vld [vmem:[#allocation77_spill] sm:$0xff]  ;;  %v4608_v14 = vand.u32 4294901760, %v3203_v54 }
  0xe2   : > { %2490 = vmatprep.subr.bf16.mxu0 %v2489_v1  ;;  %v4580_v1 = vld [vmem:[#allocation83_spill] sm:$0xff]  ;;  %v4585_v61 = vld [vmem:[#allocation93_spill] sm:$0xff]  ;;  %v3820_v16 = vpack.c.bf16 %v4589_v11, %v4588_v17 }
  0xe3   : > { %2300 = vmatpush1.bf16.msra.mxu1 %v2299_v33  ;;  %v4582_v33 = vand.u32 4294901760, %v3146_v42  ;;  %v4590_v42 = vand.u32 4294901760, %v3167_v63  ;;  %v4599_v63 = vand.u32 4294901760, %v4561_v59  ;;  %v4600_v17 = vld [vmem:[#allocation35_spill] sm:$0xff] }
  0xe4   : > { %2302 = vmatprep.subr.bf16.mxu1 %v2301_v25  ;;  %v4587_v25 = vand.u32 4294901760, %v3157_v51  ;;  %v4593_v51 = vand.u32 4294901760, %v3178_v12 }
  0xe5   : > { %2492 = vmatpush1.bf16.msra.mxu0 %v2491_v9  ;;  %v4583_v9 = vand.u32 4294901760, %v3150_v47  ;;  %v4591_v47 = vand.u32 4294901760, %v3171_v5  ;;  %v4601_v5 = vand.u32 4294901760, %v4600_v17 }
  0xe6   : > { %2494 = vmatprep.subr.bf16.mxu0 %v2493_v0  ;;  %700 = vmatmul.mubr.f32.vlgmr.msra.gmra.mrb[0].mxu1 %v4584_v19  ;;  %v3814_v0 = vpack.c.bf16 %v4587_v25, %v4586_v41  ;;  %v3832_v41 = vpack.c.bf16 %v4593_v51, %v4592_v49  ;;  %v4609_v51 = vand.u32 4294901760, %v3207_v58  ;;  %v4622_v19 = vand.u32 4294901760, %v4569_v24 }
  0xe7   : > { %v3806_v46 = vpack.c.bf16 %v4583_v9, %v4582_v33  ;;  %v3826_v33 = vpack.c.bf16 %v4591_v47, %v4590_v42  ;;  %2304 = vmatpush1.bf16.msra.mxu1 %v2303_v23  ;;  %v4596_v9 = vld [vmem:[#allocation32_spill] sm:$0xff]  ;;  %v3844_v25 = vpack.c.bf16 %v4601_v5, %v4599_v63  ;;  %v4603_v23 = vld [vmem:[#allocation37_spill] sm:$0xff]  ;;  %v4605_v42 = vld [vmem:[#allocation38_spill] sm:$0xff] }
  0xe8   : > { %1555 = vmatmul.mubr.f32.vlgmr.msra.gmra.mrb[0].mxu0 %v4585_v61  ;;  %4594 = vst [vmem:[#allocation58_spill] sm:$0xff] %v3832_v41  ;;  %v4597_v62 = vand.u32 4294901760, %v4596_v9  ;;  %2306 = vmatprep.subr.bf16.mxu1 %v2305_v57  ;;  %v4606_v47 = vand.u32 4294901760, %v4605_v42  ;;  %v4611_v9 = vand.u32 4294901760, %v3211_v60  ;;  %v4614_v57 = vmov 0.0   ;;  %v4616_v5 = vld [vmem:[#allocation44_spill] sm:$0xff] }
  0xe9   : > { %2496 = vmatpush1.bf16.msra.mxu0 %v2495_v38  ;;  %4602 = vst [vmem:[#allocation61_spill] sm:$0xff] %v3844_v25  ;;  %v4604_v38 = vand.u32 4294901760, %v4603_v23  ;;  %834 = vmatprep.mubr.f32.mxu1 %v4614_v57  ;;  %v4619_v61 = vand.u32 4294901760, %v4567_v56 }
  0xea   : > { %v3838_v11 = vpack.c.bf16 %v4597_v62, %v4595_v53  ;;  %2498 = vmatprep.subr.bf16.mxu0 %v2497_v39  ;;  %v3856_v53 = vpack.c.bf16 %v4609_v51, %v4608_v14  ;;  %v4612_v62 = vand.u32 4294901760, %v4564_v30  ;;  %1689 = vmatprep.mubr.f32.mxu0 %v4614_v57  ;;  %v4615_v39 = vand.u32 4294901760, %v4565_v32 }
  0xeb   : > { %v3850_v49 = vpack.c.bf16 %v4606_v47, %v4604_v38  ;;  %v4617_v38 = vand.u32 4294901760, %v4616_v5  ;;  %v4620_v14 = vand.u32 4294901760, %v4568_v15  ;;  %2308 = vmatpush1.bf16.msra.mxu1 %v2307_v6  ;;  %v4649_v6 = vpack.c.bf16 %v3178_v12, %v3175_v7 }
  0xec   : > { %4598 = vst [vmem:[#allocation59_spill] sm:$0xff] %v3838_v11  ;;  %4610 = vst [vmem:[#allocation71_spill] sm:$0xff] %v3856_v53  ;;  %v3862_v63 = vpack.c.bf16 %v4612_v62, %v4611_v9  ;;  %v4623_v9 = vand.u32 4294901760, %v4570_v40  ;;  %v4626_v53 = vand.u32 4294901760, %v4572_v28  ;;  %v4643_v11 = vld [vmem:[#allocation68_spill] sm:$0xff]  ;;  %v4659_v7 = vand.u32 4294901760, %v3328_v48 }
  0xed   : > { %4607 = vst [vmem:[#allocation70_spill] sm:$0xff] %v3850_v49  ;;  %v3870_v47 = vpack.c.bf16 %v4617_v38, %v4615_v39  ;;  %v3876_v51 = vpack.c.bf16 %v4620_v14, %v4619_v61  ;;  %v4628_v39 = vand.u32 4294901760, %v4573_v13  ;;  %v4629_v38 = vld [vmem:[#allocation56_spill] sm:$0xff]  ;;  %v4632_v61 = vand.u32 4294901760, %v4535_v43  ;;  %2500 = vmatpush1.bf16.msra.mxu0 %v2499_v36  ;;  %2310 = vmatprep.subr.bf16.mxu1 %v4649_v6 }
  0xee   : > { %4613 = vst [vmem:[#allocation73_spill] sm:$0xff] %v3862_v63  ;;  %v3882_v62 = vpack.c.bf16 %v4623_v9, %v4622_v19  ;;  %v4625_v63 = vand.u32 4294901760, %v4571_v26  ;;  %v4633_v14 = vand.u32 4294901760, %v4536_v37  ;;  %v4635_v19 = vand.u32 4294901760, %v4537_v50  ;;  %2502 = vmatprep.subr.bf16.mxu0 %v2501_v34 }
  0xef   : > { %4618 = vst [vmem:[#allocation74_spill] sm:$0xff] %v3870_v47  ;;  %4621 = vst [vmem:[#allocation75_spill] sm:$0xff] %v3876_v51  ;;  %v4630_v47 = vand.u32 4294901760, %v4629_v38  ;;  %v4636_v9 = vand.u32 4294901760, %v4574_v27  ;;  %v4644_v41 = vand.u32 4294901760, %v4643_v11  ;;  %v4650_v36 = vand.u32 4294901760, %v4546_v4 }
  0xf0   : > { %4624 = vst [vmem:[#allocation87_spill] sm:$0xff] %v3882_v62  ;;  %v3888_v49 = vpack.c.bf16 %v4626_v53, %v4625_v63  ;;  %v3900_v51 = vpack.c.bf16 %v4633_v14, %v4632_v61  ;;  %v4637_v53 = vand.u32 4294901760, %v4575_v35  ;;  %v4638_v63 = vld [vmem:[#allocation65_spill] sm:$0xff]  ;;  %v4646_v14 = vand.u32 4294901760, %v4543_v44 }
  0xf1   : > { %v3894_v25 = vpack.c.bf16 %v4630_v47, %v4628_v39  ;;  %v3906_v62 = vpack.c.bf16 %v4636_v9, %v4635_v19  ;;  %v4641_v39 = vld [vmem:[#allocation67_spill] sm:$0xff]  ;;  %v4660_v12 = vand.u32 4294901760, %v3330_v31  ;;  %v4662_v6 = vand.u32 4294901760, %v4578_v3 }
  0xf2   : > { %4627 = vst [vmem:[#allocation34_spill] sm:$0xff] %v3888_v49  ;;  %4634 = vst [vmem:[#allocation42_spill] sm:$0xff] %v3900_v51  ;;  %v4639_v49 = vand.u32 4294901760, %v4638_v63  ;;  %v4647_v51 = vand.u32 4294901760, %v4545_v52 }
  0xf3   : > { %4631 = vst [vmem:[#allocation41_spill] sm:$0xff] %v3894_v25  ;;  %v4642_v25 = vand.u32 4294901760, %v4641_v39  ;;  %v3951_v34 = vpack.c.bf16 %v4660_v12, %v4659_v7  ;;  %v4669_v7 = vld [vmem:[#allocation90_spill] sm:$0xff] }
  0xf4   : > { %v3912_v47 = vpack.c.bf16 %v4639_v49, %v4637_v53  ;;  %v3924_v19 = vpack.c.bf16 %v4647_v51, %v4646_v14  ;;  %v4651_v49 = vand.u32 4294901760, %v4547_v18  ;;  %v4656_v51 = vand.u32 4294901760, %v3320_v10 }
  0xf5   : > { %v3918_v61 = vpack.c.bf16 %v4644_v41, %v4642_v25  ;;  %v4653_v41 = vand.u32 4294901760, %v4548_v55  ;;  %v4654_v25 = vand.u32 4294901760, %v4577_v2  ;;  %v4657_v14 = vand.u32 4294901760, %v3324_v20  ;;  %4661 = vst [vmem:[#allocation55_spill] sm:$0xff] %v3951_v34  ;;  %v4671_v34 = vld [vmem:[#allocation91_spill] sm:$0xff] }
  0xf6   : > { %4640 = vst [vmem:[#allocation46_spill] sm:$0xff] %v3912_v47  ;;  %4648 = vst [vmem:[#allocation49_spill] sm:$0xff] %v3924_v19  ;;  %v3933_v9 = vpack.c.bf16 %v4651_v49, %v4650_v36  ;;  %v4663_v36 = vand.u32 4294901760, %v4579_v21  ;;  %v4670_v12 = vand.u32 4294901760, %v4669_v7  ;;  %v4725_v7 = vld [vmem:[#allocation15_spill] sm:$0xff] }
  0xf7   : > { %4645 = vst [vmem:[#allocation47_spill] sm:$0xff] %v3918_v61  ;;  %v3939_v53 = vpack.c.bf16 %v4654_v25, %v4653_v41  ;;  %v3945_v19 = vpack.c.bf16 %v4657_v14, %v4656_v51  ;;  %v4664_v41 = vand.u32 4294901760, %v4580_v1  ;;  %v4665_v25 = vand.u32 4294901760, %v4581_v22  ;;  %v4667_v14 = vld [vmem:[#allocation88_spill] sm:$0xff] }
  0xf8   : > { %4652 = vst [vmem:[#allocation50_spill] sm:$0xff] %v3933_v9  ;;  %v3957_v49 = vpack.c.bf16 %v4663_v36, %v4662_v6  ;;  %v4666_v51 = vand.u32 4294901760, %v4553_v29  ;;  %v4672_v61 = vand.u32 4294901760, %v4671_v34  ;;  %v4673_v6 = vpack.c.bf16 %v4600_v17, %v4561_v59  ;;  %v4720_v34 = vld [vmem:[#allocation76_spill] sm:$0xff] }
  0xf9   : > { %4655 = vst [vmem:[#allocation51_spill] sm:$0xff] %v3939_v53  ;;  %4658 = vst [vmem:[#allocation53_spill] sm:$0xff] %v3945_v19  ;;  %v3963_v53 = vpack.c.bf16 %v4665_v25, %v4664_v41  ;;  %v4668_v19 = vand.u32 4294901760, %v4667_v14  ;;  %v4674_v36 = vpack.c.bf16 %v4605_v42, %v4603_v23  ;;  %v4675_v29 = vpack.c.bf16 %v3207_v58, %v3203_v54  ;;  %v4714_v23 = vld [vmem:[#allocation57_spill] sm:$0xff]  ;;  %v4715_v42 = vld [vmem:[#allocation60_spill] sm:$0xff] }
  0xfa   : > { %v3975_v47 = vpack.c.bf16 %v4672_v61, %v4670_v12  ;;  %2312 = vmatpush1.bf16.msra.mxu1 %v4673_v6  ;;  %v4677_v61 = vpack.c.bf16 %v4616_v5, %v4565_v32  ;;  %v4678_v59 = vpack.c.bf16 %v4568_v15, %v4567_v56  ;;  %v4679_v17 = vpack.c.bf16 %v4570_v40, %v4569_v24  ;;  %v4705_v32 = vld [vmem:[#allocation33_spill] sm:$0xff]  ;;  %v4716_v5 = vld [vmem:[#allocation64_spill] sm:$0xff]  ;;  %v4721_v41 = vld [vmem:[#allocation78_spill] sm:$0xff] }
  0xfb   : > { %v3969_v9 = vpack.c.bf16 %v4668_v19, %v4666_v51  ;;  %2504 = vmatpush1.bf16.msra.mxu0 %v4674_v36  ;;  %2314 = vmatprep.subr.bf16.mxu1 %v4675_v29  ;;  %v4676_v19 = vpack.c.bf16 %v4564_v30, %v3211_v60  ;;  %v4680_v54 = vpack.c.bf16 %v4572_v28, %v4571_v26  ;;  %v4708_v30 = vld [vmem:[#allocation40_spill] sm:$0xff]  ;;  %v4710_v24 = vld [vmem:[#allocation45_spill] sm:$0xff]  ;;  %v4722_v25 = vld [vmem:[#allocation79_spill] sm:$0xff]  ;;  %v4726_v12 = vand.u32 4294901760, %v4725_v7 }
  0xfc   : > { %v4681_v58 = vpack.c.bf16 %v4629_v38, %v4573_v13  ;;  %v4682_v60 = vpack.c.bf16 %v4536_v37, %v4535_v43  ;;  %v4683_v15 = vpack.c.bf16 %v4574_v27, %v4537_v50  ;;  %v4684_v40 = vpack.c.bf16 %v4638_v63, %v4575_v35  ;;  %v4706_v13 = vld [vmem:[#allocation36_spill] sm:$0xff]  ;;  %v4707_v35 = vld [vmem:[#allocation39_spill] sm:$0xff]  ;;  %v4717_v38 = vld [vmem:[#allocation66_spill] sm:$0xff] }
  0xfd   : > { %2506 = vmatprep.subr.bf16.mxu0 %v4676_v19  ;;  %v4685_v26 = vpack.c.bf16 %v4643_v11, %v4641_v39  ;;  %v4686_v28 = vpack.c.bf16 %v4545_v52, %v4543_v44  ;;  %v4687_v37 = vpack.c.bf16 %v4547_v18, %v4546_v4  ;;  %v4688_v43 = vpack.c.bf16 %v4577_v2, %v4548_v55  ;;  %v4693_v55 = vld [vmem:[#allocation14_spill] sm:$0xff]  ;;  %v4700_v18 = vld [vmem:[#allocation27_spill] sm:$0xff]  ;;  %v4711_v2 = vld [vmem:[#allocation48_spill] sm:$0xff] }
  0xfe   : > { %2316 = vmatpush1.bf16.msra.mxu1 %v4677_v61  ;;  %v4689_v50 = vpack.c.bf16 %v3324_v20, %v3320_v10  ;;  %v4690_v56 = vpack.c.bf16 %v3330_v31, %v3328_v48  ;;  %v4691_v52 = vpack.c.bf16 %v4579_v21, %v4578_v3  ;;  %v4692_v44 = vpack.c.bf16 %v4581_v22, %v4580_v1  ;;  %v4694_v4 = vld [vmem:[#allocation18_spill] sm:$0xff]  ;;  %v4696_v20 = vld [vmem:[#allocation95_spill] sm:$0xff]  ;;  %v4697_v48 = vld [vmem:[#allocation20_spill] sm:$0xff] }
  0xff   : > { %2508 = vmatpush1.bf16.msra.mxu0 %v4678_v59  ;;  %2318 = vmatprep.subr.bf16.mxu1 %v4679_v17  ;;  %v4695_v10 = vld [vmem:[#allocation94_spill] sm:$0xff]  ;;  %v4698_v31 = vld [vmem:[#allocation23_spill] sm:$0xff]  ;;  %v4702_v22 = vld [vmem:[#allocation29_spill] sm:$0xff] }
 0x100   : > { %2510 = vmatprep.subr.bf16.mxu0 %v4680_v54  ;;  %v4699_v21 = vld [vmem:[#allocation26_spill] sm:$0xff]  ;;  %v4704_v3 = vld [vmem:[#allocation31_spill] sm:$0xff]  ;;  %v4712_v1 = vld [vmem:[#allocation52_spill] sm:$0xff]  ;;  %v4743_v7 = vand.u32 4294901760, %v4695_v10 }
 0x101   : > { %v4709_v27 = vld [vmem:[#allocation43_spill] sm:$0xff]  ;;  %v4713_v11 = vld [vmem:[#allocation54_spill] sm:$0xff]  ;;  %v4718_v63 = vld [vmem:[#allocation69_spill] sm:$0xff] }
 0x102   : > { %2320 = vmatpush1.bf16.msra.mxu1 %v4681_v58  ;;  %v4719_v39 = vld [vmem:[#allocation72_spill] sm:$0xff]  ;;  %v4729_v19 = vld [vmem:[#allocation17_spill] sm:$0xff]  ;;  %v4731_v59 = vld [vmem:[#allocation19_spill] sm:$0xff] }
 0x103   : > { %2512 = vmatpush1.bf16.msra.mxu0 %v4682_v60  ;;  %2322 = vmatprep.subr.bf16.mxu1 %v4683_v15  ;;  %v4723_v51 = vld [vmem:[#allocation80_spill] sm:$0xff]  ;;  %v4730_v61 = vand.u32 4294901760, %v4729_v19  ;;  %v4732_v17 = vand.u32 4294901760, %v4731_v59  ;;  %v4733_v58 = vld [vmem:[#allocation86_spill] sm:$0xff]  ;;  %v4734_v60 = vld [vmem:[#allocation89_spill] sm:$0xff] }
 0x104   : > { %2514 = vmatprep.subr.bf16.mxu0 %v4684_v40  ;;  %v4724_v14 = vld [vmem:[#allocation84_spill] sm:$0xff]  ;;  %v4735_v15 = vld [vmem:[#allocation21_spill] sm:$0xff]  ;;  %v4752_v19 = vld [vmem:[#allocation75_spill] sm:$0xff] }
 0x105   : > { %v4727_v6 = vld [vmem:[#allocation16_spill] sm:$0xff]  ;;  %v2557_v54 = vpack.c.bf16 %v4732_v17, %v4730_v61  ;;  %v4736_v40 = vand.u32 4294901760, %v4735_v15  ;;  %v4753_v61 = vld [vmem:[#allocation87_spill] sm:$0xff]  ;;  %v4756_v59 = vld [vmem:[#allocation42_spill] sm:$0xff] }
 0x106   : > { %2324 = vmatpush1.bf16.msra.mxu1 %v4685_v26  ;;  %v4728_v36 = vand.u32 4294901760, %v4727_v6  ;;  %v4737_v26 = vld [vmem:[#allocation22_spill] sm:$0xff]  ;;  %v4759_v15 = vld [vmem:[#allocation49_spill] sm:$0xff] }
 0x107   : > { %2516 = vmatpush1.bf16.msra.mxu0 %v4686_v28  ;;  %2326 = vmatprep.subr.bf16.mxu1 %v4687_v37  ;;  %v4738_v28 = vand.u32 4294901760, %v4737_v26  ;;  %v4745_v6 = vld [vmem:[#allocation58_spill] sm:$0xff]  ;;  %v4761_v26 = vld [vmem:[#allocation51_spill] sm:$0xff] }
 0x108   : > { %2518 = vmatprep.subr.bf16.mxu0 %v4688_v43  ;;  %v2365_v29 = vpack.c.bf16 %v4728_v36, %v4726_v12  ;;  %v4739_v43 = vld [vmem:[#allocation24_spill] sm:$0xff]  ;;  %v4744_v12 = vand.u32 4294901760, %v4696_v20  ;;  %v4748_v36 = vld [vmem:[#allocation70_spill] sm:$0xff] }
 0x109   : > { %v2367_v37 = vpack.c.bf16 %v4738_v28, %v4736_v40  ;;  %v4757_v17 = vld [vmem:[#allocation46_spill] sm:$0xff]  ;;  %v4762_v28 = vld [vmem:[#allocation53_spill] sm:$0xff] }
 0x10a   : > { %2328 = vmatpush1.bf16.msra.mxu1 %v4689_v50  ;;  %v4740_v50 = vand.u32 4294901760, %v4739_v43  ;;  %v4760_v40 = vld [vmem:[#allocation50_spill] sm:$0xff]  ;;  %v4765_v43 = vld [vmem:[#allocation93_spill] sm:$0xff] }
 0x10b   : > { %2520 = vmatpush1.bf16.msra.mxu0 %v4690_v56  ;;  %2330 = vmatprep.subr.bf16.mxu1 %v4691_v52  ;;  %v4741_v56 = vld [vmem:[#allocation25_spill] sm:$0xff] }
 0x10c   : > { %2522 = vmatprep.subr.bf16.mxu0 %v4692_v44  ;;  %v4742_v52 = vand.u32 4294901760, %v4741_v56 }
 0x10e   : > { %2332 = vmatpush1.bf16.msra.mxu1 %v2331_v45  ;;  %v4701_v45 = vld [vmem:[#allocation28_spill] sm:$0xff]  ;;  %v2559_v44 = vpack.c.bf16 %v4742_v52, %v4740_v50 }
 0x10f   : > { %2524 = vmatpush1.bf16.msra.mxu0 %v2523_v8  ;;  %2334 = vmatprep.subr.bf16.mxu1 %v4693_v55  ;;  %v4703_v8 = vld [vmem:[#allocation30_spill] sm:$0xff] }
 0x110   : > { %2526 = vmatprep.subr.bf16.mxu0 %v4694_v4 }
 0x111   : > { %837 = vmatmul.mubr.f32.vlgmr.msra.gmra.mrb[0].mxu1 %v4695_v10  ;;  %v4746_v10 = vld [vmem:[#allocation59_spill] sm:$0xff] }
 0x112   : > { %1692 = vmatmul.mubr.f32.vlgmr.msra.gmra.mrb[0].mxu0 %v4696_v20  ;;  %2336 = vmatpush1.bf16.msra.mxu1 %v4697_v48  ;;  %v4747_v20 = vld [vmem:[#allocation61_spill] sm:$0xff] }
 0x113   : > { %2528 = vmatpush1.bf16.msra.mxu0 %v4698_v31  ;;  %2338 = vmatprep.subr.bf16.mxu1 %v4699_v21 }
 0x114   : > { %2530 = vmatprep.subr.bf16.mxu0 %v4700_v18  ;;  %939 = vmatprep.mubr.f32.mxu1 %v4614_v57 }
 0x115   : > { %1794 = vmatprep.mubr.f32.mxu0 %v4614_v57 }
 0x116   : > { %2340 = vmatpush1.bf16.msra.mxu1 %v4701_v45 }
 0x117   : > { %2532 = vmatpush1.bf16.msra.mxu0 %v4702_v22  ;;  %2342 = vmatprep.subr.bf16.mxu1 %v4703_v8 }
 0x118   : > { %2534 = vmatprep.subr.bf16.mxu0 %v4704_v3 }
 0x11a   : > { %2344 = vmatpush1.bf16.msra.mxu1 %v4705_v32 }
 0x11b   : > { %2536 = vmatpush1.bf16.msra.mxu0 %v4706_v13  ;;  %2346 = vmatprep.subr.bf16.mxu1 %v4707_v35 }
 0x11c   : > { %2538 = vmatprep.subr.bf16.mxu0 %v4708_v30 }
 0x11e   : > { %2348 = vmatpush1.bf16.msra.mxu1 %v4709_v27 }
 0x11f   : > { %2540 = vmatpush1.bf16.msra.mxu0 %v4710_v24  ;;  %2350 = vmatprep.subr.bf16.mxu1 %v4711_v2 }
 0x120   : > { %2542 = vmatprep.subr.bf16.mxu0 %v4712_v1 }
 0x122   : > { %2352 = vmatpush1.bf16.msra.mxu1 %v4713_v11 }
 0x123   : > { %2544 = vmatpush1.bf16.msra.mxu0 %v4714_v23  ;;  %2354 = vmatprep.subr.bf16.mxu1 %v4715_v42 }
 0x124   : > { %2546 = vmatprep.subr.bf16.mxu0 %v4716_v5 }
 0x126   : > { %2356 = vmatpush1.bf16.msra.mxu1 %v4717_v38 }
 0x127   : > { %2548 = vmatpush1.bf16.msra.mxu0 %v4718_v63  ;;  %2358 = vmatprep.subr.bf16.mxu1 %v4719_v39 }
 0x128   : > { %2550 = vmatprep.subr.bf16.mxu0 %v4720_v34 }
 0x12a   : > { %2360 = vmatpush1.bf16.msra.mxu1 %v4721_v41 }
 0x12b   : > { %2552 = vmatpush1.bf16.msra.mxu0 %v4722_v25  ;;  %2362 = vmatprep.subr.bf16.mxu1 %v4723_v51 }
 0x12c   : > { %2554 = vmatprep.subr.bf16.mxu0 %v4724_v14 }
 0x12e   : > { %2364 = vmatpush1.bf16.msra.mxu1 %v4733_v58 }
 0x12f   : > { %2556 = vmatpush1.bf16.msra.mxu0 %v4734_v60  ;;  %2366 = vmatprep.subr.bf16.mxu1 %v2365_v29  ;;  %v4749_v29 = vld [vmem:[#allocation71_spill] sm:$0xff] }
 0x130   : > { %2558 = vmatprep.subr.bf16.mxu0 %v2557_v54  ;;  %v4758_v54 = vld [vmem:[#allocation47_spill] sm:$0xff] }
 0x131   : > { %943 = vmatmul.mubr.f32.vlgmr.msra.gmra.mrb[0].mxu1 %v4743_v7 }
 0x132   : > { %1798 = vmatmul.mubr.f32.vlgmr.msra.gmra.mrb[0].mxu0 %v4744_v12  ;;  %2368 = vmatpush1.bf16.msra.mxu1 %v2367_v37  ;;  %v4763_v37 = vld [vmem:[#allocation55_spill] sm:$0xff] }
 0x133   : > { %2560 = vmatpush1.bf16.msra.mxu0 %v2559_v44  ;;  %2370 = vmatprep.subr.bf16.mxu1 %v3806_v46  ;;  %v4750_v46 = vld [vmem:[#allocation73_spill] sm:$0xff] }
 0x134   : > { %2562 = vmatprep.subr.bf16.mxu0 %v3814_v0  ;;  %1109 = vmatprep.mubr.f32.mxu1 %v4614_v57  ;;  %v4751_v0 = vld [vmem:[#allocation74_spill] sm:$0xff] }
 0x135   : > { %1964 = vmatprep.mubr.f32.mxu0 %v4614_v57 }
 0x136   : > { %2372 = vmatpush1.bf16.msra.mxu1 %v3820_v16  ;;  %v4754_v16 = vld [vmem:[#allocation34_spill] sm:$0xff] }
 0x137   : > { %2564 = vmatpush1.bf16.msra.mxu0 %v3826_v33  ;;  %2374 = vmatprep.subr.bf16.mxu1 %v4745_v6  ;;  %v4755_v33 = vld [vmem:[#allocation41_spill] sm:$0xff] }
 0x138   : > { %2566 = vmatprep.subr.bf16.mxu0 %v4746_v10 }
 0x13a   : > { %2376 = vmatpush1.bf16.msra.mxu1 %v4747_v20 }
 0x13b   : > { %2568 = vmatpush1.bf16.msra.mxu0 %v4748_v36  ;;  %2378 = vmatprep.subr.bf16.mxu1 %v4749_v29 }
 0x13c   : > { %2570 = vmatprep.subr.bf16.mxu0 %v4750_v46 }
 0x13e   : > { %2380 = vmatpush1.bf16.msra.mxu1 %v4751_v0 }
 0x13f   : > { %2572 = vmatpush1.bf16.msra.mxu0 %v4752_v19  ;;  %2382 = vmatprep.subr.bf16.mxu1 %v4753_v61 }
 0x140   : > { %2574 = vmatprep.subr.bf16.mxu0 %v4754_v16 }
 0x142   : > { %2384 = vmatpush1.bf16.msra.mxu1 %v4755_v33 }
 0x143   : > { %2576 = vmatpush1.bf16.msra.mxu0 %v4756_v59  ;;  %2386 = vmatprep.subr.bf16.mxu1 %v3906_v62  ;;  %v4764_v62 = vld [vmem:[#allocation92_spill] sm:$0xff] }
 0x144   : > { %2578 = vmatprep.subr.bf16.mxu0 %v4757_v17 }
 0x146   : > { %2388 = vmatpush1.bf16.msra.mxu1 %v4758_v54 }
 0x147   : > { %2580 = vmatpush1.bf16.msra.mxu0 %v4759_v15  ;;  %2390 = vmatprep.subr.bf16.mxu1 %v4760_v40 }
 0x148   : > { %2582 = vmatprep.subr.bf16.mxu0 %v4761_v26 }
 0x14a   : > { %2392 = vmatpush1.bf16.msra.mxu1 %v4762_v28 }
 0x14b   : > { %2584 = vmatpush1.bf16.msra.mxu0 %v4763_v37  ;;  %2394 = vmatprep.subr.bf16.mxu1 %v3957_v49 }
 0x14c   : > { %2586 = vmatprep.subr.bf16.mxu0 %v3963_v53 }
 0x14e   : > { %2396 = vmatpush1.bf16.msra.mxu1 %v3969_v9 }
 0x14f   : > { %2588 = vmatpush1.bf16.msra.mxu0 %v3975_v47  ;;  %2398 = vmatprep.subr.bf16.mxu1 %v4693_v55 }
 0x150   : > { %2590 = vmatprep.subr.bf16.mxu0 %v4694_v4 }
 0x151   : > { %1111 = vmatmul.mubr.f32.vlgmr.msra.gmra.mrb[0].mxu1 %v4764_v62 }
 0x152   : > { %1966 = vmatmul.mubr.f32.vlgmr.msra.gmra.mrb[0].mxu0 %v4765_v43  ;;  %2400 = vmatpush1.bf16.msra.mxu1 %v4697_v48 }
 0x153   : > { %2592 = vmatpush1.bf16.msra.mxu0 %v4698_v31  ;;  %2402 = vmatprep.subr.bf16.mxu1 %v4699_v21 }
 0x154   : > { %2594 = vmatprep.subr.bf16.mxu0 %v4700_v18  ;;  %1213 = vmatprep.mubr.f32.mxu1 %v4614_v57 }
 0x155   : > { %2068 = vmatprep.mubr.f32.mxu0 %v4614_v57 }
 0x156   : > { %2404 = vmatpush1.bf16.msra.mxu1 %v4701_v45 }
 0x157   : > { %2596 = vmatpush1.bf16.msra.mxu0 %v4702_v22  ;;  %2406 = vmatprep.subr.bf16.mxu1 %v4703_v8 }
 0x158   : > { %2598 = vmatprep.subr.bf16.mxu0 %v4704_v3 }
 0x15a   : > { %2408 = vmatpush1.bf16.msra.mxu1 %v4705_v32 }
 0x15b   : > { %2600 = vmatpush1.bf16.msra.mxu0 %v4706_v13  ;;  %2410 = vmatprep.subr.bf16.mxu1 %v4707_v35 }
 0x15c   : > { %2602 = vmatprep.subr.bf16.mxu0 %v4708_v30 }
 0x15e   : > { %2412 = vmatpush1.bf16.msra.mxu1 %v4709_v27 }
 0x15f   : > { %2604 = vmatpush1.bf16.msra.mxu0 %v4710_v24  ;;  %2414 = vmatprep.subr.bf16.mxu1 %v4711_v2 }
 0x160   : > { %2606 = vmatprep.subr.bf16.mxu0 %v4712_v1 }
 0x162   : > { %2416 = vmatpush1.bf16.msra.mxu1 %v4713_v11 }
 0x163   : > { %2608 = vmatpush1.bf16.msra.mxu0 %v4714_v23  ;;  %2418 = vmatprep.subr.bf16.mxu1 %v4715_v42 }
 0x164   : > { %2610 = vmatprep.subr.bf16.mxu0 %v4716_v5 }
 0x166   : > { %2420 = vmatpush1.bf16.msra.mxu1 %v4717_v38 }
 0x167   : > { %2612 = vmatpush1.bf16.msra.mxu0 %v4718_v63  ;;  %2422 = vmatprep.subr.bf16.mxu1 %v4719_v39 }
 0x168   : > { %2614 = vmatprep.subr.bf16.mxu0 %v4720_v34 }
 0x16a   : > { %2424 = vmatpush1.bf16.msra.mxu1 %v4721_v41 }
 0x16b   : > { %2616 = vmatpush1.bf16.msra.mxu0 %v4722_v25  ;;  %2426 = vmatprep.subr.bf16.mxu1 %v4723_v51 }
 0x16c   : > { %2618 = vmatprep.subr.bf16.mxu0 %v4724_v14 }
 0x16e   : > { %2428 = vmatpush1.bf16.msra.mxu1 %v4733_v58 }
 0x16f   : > { %2620 = vmatpush1.bf16.msra.mxu0 %v4734_v60 }
 0x171   : > { %1215 = vmatmul.mubr.f32.vlgmr.msra.gmra.mrb[0].mxu1 %v4764_v62 }
 0x172   : > { %2070 = vmatmul.mubr.f32.vlgmr.msra.gmra.mrb[0].mxu0 %v4765_v43 }
 0x244   : > { %v1216_v57 = vpop.f32.mrb[0].mxu1 }
 0x245   : > { %v2071_v47 = vpop.f32.mrb[0].mxu0  ;;  %v1218_v53 = vpop.f32.mrb[1].mxu1 }
 0x246   : > { %v2621_v9 = vadd.f32 %v2071_v47, %v1216_v57  ;;  %v2073_v49 = vpop.f32.mrb[1].mxu0 }
 0x247   : > { %v2622_v55 = vadd.f32 %v2073_v49, %v1218_v53 }
 0x249   : > { %v2078_v4 = vcombine.low %v2621_v9, %v2622_v55 }
 0x24b   : > { %2229 = vst.sshfl [vmem:[%s232_s5] sm:$0x33 pattern:$0x76325410] %v2078_v4 }
 0x24c   : > { %2819 = shalt.err (!%p2816_p12)
}
 0x24d   : > { %s2820_s4 = scalar_lea.hbm %s4166_s26, 64  ;;  %s2824_s21 = scalar_lea.hbm %s4218_s3, 128 }
 0x24e   : > { %p2821_p5 = scmp.ne.s32.totalorder %s4166_s26, %s2820_s4  ;;  %p2825_p10 = scmp.lt.u32.totalorder %s4166_s26, %s4218_s3 }
 0x24f   : > { %p2826_p2 = scmp.lt.u32.totalorder %s2824_s21, %s2820_s4  ;;  %p2828_p13 = scmp.lt.u32.totalorder %s2820_s4, %s4166_s26 }
 0x250   : > { %p2822_p3 = pnand %p2821_p5, %p4766_p4 }
 0x251   : > { %p2827_p7 = por %p2826_p2, %p2825_p10 }
 0x252   : > { %p2823_p6 = pneg %p2822_p3 }
 0x253   : > { %p2829_p11 = por %p2828_p13, %p2827_p7 }
 0x255   : > { %p2830_p1 = pnand %p2829_p11, %p2823_p6 }
 0x257   : > { %2833 = shalt.err (!%p2830_p1)
}
 0x258   : > { %2655 = dma.vmem_to_hbm [thread:$0]  (%p4766_p4), %s4168_s20, 64, %s4166_s26, %s2089_s22  }
 0x259 PF: > { %s2117_s7 = sand.u32 1, %s2876_s12   ;;  %p4767_p0 = scmp.ne.s32.totalorder %s4441_s24, 0 }
 0x25a   : > { %p4768_p8 = scmp.ge.s32.totalorder %s2896_s17, 2  ;;  %s2118_s6 = scalar_lea.sflag [#allocation4], %s2117_s7 }
 0x25c   : > { %p2669_p9 = pnand %p4768_p8, %p4767_p0 }
 0x25e   : > { %2871 = dma.done.wait (!%p2669_p9), %s2118_s6, 64  }
 0x25f   : > { %2873 = vsyncadd (!%p2669_p9), %s2118_s6, 4294967232  ;;  %s21_s17 = sadd.s32 1, %s2896_s17   ;;  %s4769_s12 = smov %s2880_s13 }
 0x260   : > { %p18_p12 = scmp.ge.s32.totalorder %s21_s17, 4   ;;  %s4770_s13 = smov %s2884_s14 }
 0x261   : > { %s4771_s14 = smov %s3066_s9  ;;  %s4772_s15 = smov %s2892_s16 }
 0x262   : > { %s4773_s16 = smov %s4775_s19  ;;  %20 = sbr.rel (!%p18_p12) target bundleno = 8 (0x8), region = 90 }
 0x269   :  { %2123 = vsyncpa [#allocation3], 1 }
 0x26a   :  { %2125 = vsyncpa [#allocation3 + $0x1], 1 }
 0x26b   :  { %2126 = vsyncpa [#allocation8], 1 }
 0x26c   :  { %2128 = vsyncpa [#allocation8 + $0x1], 1 }
 0x26d   :  { %2129 = vsyncpa [#allocation4], 1 }
 0x26e   :  { %2131 = vsyncpa [#allocation4 + $0x1], 1 }
 0x26f   :  { %2132 = vsyncpa [#allocation5], 1 }
 0x270   :  { %2134 = vsyncpa [#allocation5 + $0x1], 1 }

</bundles_post_ra>
